<compile_context>
chip_gen: v5e
topology: v5e:2x2
jax: 0.10.0
libtpu: 0.0.40
codegen_flags: <defaults>
</compile_context>

<pallas_src>
import math
import functools

import jax
import jax.numpy as jnp
from jax.experimental import pallas as pl
from jax.experimental.pallas import tpu as pltpu


# ----------------------------- helpers -------------------------------------

def _layernorm(x, w, b, eps=1e-5):
    mu = jnp.mean(x, axis=-1, keepdims=True)
    var = jnp.mean((x - mu) ** 2, axis=-1, keepdims=True)
    return (x - mu) * jax.lax.rsqrt(var + eps) * w + b


def positional_encoding(seq_len, d_model):
    position = jnp.arange(seq_len, dtype=jnp.float32)[:, None]            # (S,1)
    div_term = jnp.exp(jnp.arange(0, d_model, 2, dtype=jnp.float32)
                       * (-math.log(10000.0) / d_model))                  # (D/2,)
    sin = jnp.sin(position * div_term)
    cos = jnp.cos(position * div_term)
    pe = jnp.stack([sin, cos], axis=-1).reshape(seq_len, d_model)          # interleaved
    return pe.astype(jnp.float32)


def _pick_tile(total, candidates):
    for c in candidates:
        if total % c == 0:
            return c
    return total


def _vmem_limit_bytes():
    try:
        kind = jax.devices()[0].device_kind.lower()
    except Exception:
        kind = ""
    if "v7" in kind:
        return 48 * 1024 * 1024          # 64 MiB physical per TC on v7x
    if any(t in kind for t in ("v4", "v5", "v6")):
        return 100 * 1024 * 1024         # 128 MiB physical
    return 64 * 1024 * 1024


# ------------------------------ kernels --------------------------------------

def embed_kernel(src_ref, pe_ref, enc_w_ref, enc_b_ref, x_ref, *, scale):
    """(1,S,T) src block -> (1,S,D) embedded block: (x@W+b)*sqrt(D) + PE."""
    f32 = jnp.float32
    y = jnp.dot(src_ref[0].astype(jnp.bfloat16), enc_w_ref[...],
                preferred_element_type=f32)
    x_ref[0] = (y + enc_b_ref[...]) * scale + pe_ref[...]


def layer_kernel(x_in_ref, wqkv_ref, bqkv_ref, wo_ref, bo_ref,
                 ln1w_ref, ln1b_ref, w1_ref, b1_ref, w2_ref, b2_ref,
                 ln2w_ref, ln2b_ref, x_out_ref, x_ref,
                 *, S, D, nhead, qblock):
    """One TransformerEncoderLayer per grid step; grid = (batch, layer)."""
    l = pl.program_id(1)
    nl = pl.num_programs(1)
    hd = D // nhead
    bf16, f32 = jnp.bfloat16, jnp.float32

    # load the embedded activation into the resident scratch on the first layer
    @pl.when(l == 0)
    def _load():
        x_ref[...] = x_in_ref[0]

    x = x_ref[...]                                    # (S, D) f32
    # fused QKV projection (K/V needed over the full sequence for every q-block)
    qkv = jnp.dot(x.astype(bf16), wqkv_ref[0],
                  preferred_element_type=f32) + bqkv_ref[0]
    q = qkv[:, 0:D]                                   # 1/sqrt(hd) folded into W_q
    k = qkv[:, D:2 * D]
    v = qkv[:, 2 * D:3 * D]

    for qi in range(S // qblock):                     # static q-row blocks
        r0 = qi * qblock
        # causal additive mask generated in-kernel (no (S,S) HBM input)
        rowi = jax.lax.broadcasted_iota(jnp.int32, (qblock, S), 0) + r0
        coli = jax.lax.broadcasted_iota(jnp.int32, (qblock, S), 1)
        bias = jnp.where(coli <= rowi, 0.0, -1e30).astype(f32)

        # per-head outputs accumulated straight through wo (no concatenate)
        attn = jnp.zeros((qblock, D), f32) + bo_ref[0]
        for h in range(nhead):                        # static, nhead is small
            cs = slice(h * hd, (h + 1) * hd)
            qh = q[r0:r0 + qblock, cs].astype(bf16)
            kh = k[:, cs].astype(bf16)
            vh = v[:, cs].astype(bf16)
            s = jax.lax.dot_general(qh, kh, (((1,), (1,)), ((), ())),
                                    preferred_element_type=f32) + bias
            s = s - jnp.max(s, axis=-1, keepdims=True)
            p = jnp.exp(s)
            p = p * pl.reciprocal(jnp.sum(p, axis=-1, keepdims=True), approx=True)
            hv = jnp.dot(p.astype(bf16), vh, preferred_element_type=f32)
            attn = attn + jnp.dot(hv.astype(bf16), wo_ref[0, h],
                                  preferred_element_type=f32)

        # post-LN residual block + ReLU FFN, all row-wise -> done per q-block
        x1 = _layernorm(x[r0:r0 + qblock, :] + attn, ln1w_ref[0], ln1b_ref[0])
        ff = jnp.dot(x1.astype(bf16), w1_ref[0],
                     preferred_element_type=f32) + b1_ref[0]
        ff = jnp.maximum(ff, 0.0)
        ff = jnp.dot(ff.astype(bf16), w2_ref[0],
                     preferred_element_type=f32) + b2_ref[0]
        x_ref[r0:r0 + qblock, :] = _layernorm(x1 + ff, ln2w_ref[0], ln2b_ref[0])

    @pl.when(l == nl - 1)
    def _store():
        x_out_ref[0] = x_ref[...]


def decode_kernel(x_ref, dec_w_ref, dec_b_ref, out_ref):
    """(RT, D) rows x (D, VT) vocab tile -> (RT, VT) logits tile."""
    out_ref[...] = (jnp.dot(x_ref[...].astype(jnp.bfloat16), dec_w_ref[...],
                            preferred_element_type=jnp.float32)
                    + dec_b_ref[...])


# --------------------------- pallas wrapper ----------------------------------

def transformer_forward(params, src_sbt, *, ninp, nhead, nhid):
    """src_sbt: (S, B, ntoken) float32 -> (S, B, ntoken) float32."""
    del nhid  # hidden dim is carried by the weight shapes
    S, B, T = src_sbt.shape
    D = ninp
    L = params["wqkv"].shape[0]
    Tp = params["dec_w"].shape[1]
    vmem = _vmem_limit_bytes()

    x = jnp.transpose(src_sbt, (1, 0, 2))             # (B, S, T)
    pe = positional_encoding(S, D)                    # (S, D)

    # ---- stage 1: embedding (encoder Linear * sqrt(D) + positional encoding) --
    h = pl.pallas_call(
        functools.partial(embed_kernel, scale=math.sqrt(D)),
        grid=(B,),
        in_specs=[
            pl.BlockSpec((1, S, T), lambda b: (b, 0, 0)),
            pl.BlockSpec((S, D), lambda b: (0, 0)),
            pl.BlockSpec((T, D), lambda b: (0, 0)),
            pl.BlockSpec((1, D), lambda b: (0, 0)),
        ],
        out_specs=pl.BlockSpec((1, S, D), lambda b: (b, 0, 0)),
        out_shape=jax.ShapeDtypeStruct((B, S, D), jnp.float32),
        compiler_params=pltpu.CompilerParams(
            dimension_semantics=("parallel",), vmem_limit_bytes=vmem),
    )(x, pe, params["enc_w"], params["enc_b"])

    # ---- stage 2: N encoder layers, grid = (batch, layer) --------------------
    qblock = _pick_tile(S, [256, 128, 64, 32, 16, 8])

    def per_layer(arr):
        nd = arr.ndim
        return pl.BlockSpec((1,) + arr.shape[1:],
                            lambda b, l: (l,) + (0,) * (nd - 1))

    layer_keys = ("wqkv", "bqkv", "wo", "bo", "ln1w", "ln1b",
                  "w1", "b1", "w2", "b2", "ln2w", "ln2b")
    h = pl.pallas_call(
        functools.partial(layer_kernel, S=S, D=D, nhead=nhead, qblock=qblock),
        grid=(B, L),
        in_specs=[pl.BlockSpec((1, S, D), lambda b, l: (b, 0, 0))]
                 + [per_layer(params[kk]) for kk in layer_keys],
        out_specs=pl.BlockSpec((1, S, D), lambda b, l: (b, 0, 0)),
        out_shape=jax.ShapeDtypeStruct((B, S, D), jnp.float32),
        scratch_shapes=[pltpu.VMEM((S, D), jnp.float32)],
        compiler_params=pltpu.CompilerParams(
            dimension_semantics=("parallel", "arbitrary"),
            vmem_limit_bytes=vmem),
    )(h, *[params[kk] for kk in layer_keys])

    # ---- stage 3: decoder projection, tiled rows x 128-wide vocab tiles ------
    BS = B * S
    RT = _pick_tile(BS, [512, 256, 128, 64, 32, 16, 8])
    VT = _pick_tile(Tp, [512, 256, 128])
    logits = pl.pallas_call(
        decode_kernel,
        grid=(BS // RT, Tp // VT),
        in_specs=[
            pl.BlockSpec((RT, D), lambda r, v: (r, 0)),
            pl.BlockSpec((D, VT), lambda r, v: (0, v)),
            pl.BlockSpec((1, VT), lambda r, v: (0, v)),
        ],
        out_specs=pl.BlockSpec((RT, VT), lambda r, v: (r, v)),
        out_shape=jax.ShapeDtypeStruct((BS, Tp), jnp.float32),
        compiler_params=pltpu.CompilerParams(
            dimension_semantics=("parallel", "parallel"),
            vmem_limit_bytes=vmem),
    )(h.reshape(BS, D), params["dec_w"], params["dec_b"])

    out = logits.reshape(B, S, Tp)[:, :, :T]           # drop vocab lane padding
    return jnp.transpose(out, (1, 0, 2))               # back to (S, B, ntoken)


# ------------------------------ params ---------------------------------------

def init_params(key, ntoken, ninp, nhead, nhid, nlayers):
    initrange = 0.1
    Tp = ((ntoken + 127) // 128) * 128        # lane-pad the vocab dim
    hd = ninp // nhead
    keys = jax.random.split(key, 3 + 6 * nlayers)
    ki = iter(keys)

    def u(k, shape, r):
        return jax.random.uniform(k, shape, jnp.float32, -r, r)

    enc_w = u(next(ki), (ntoken, ninp), initrange)          # (T, D) pre-transposed
    enc_b = u(next(ki), (1, ninp), 1.0 / math.sqrt(ntoken))
    dec_w = u(next(ki), (ninp, ntoken), initrange)          # (D, T)
    dec_w = jnp.pad(dec_w, ((0, 0), (0, Tp - ntoken)))      # zero-pad vocab -> Tp
    dec_b = jnp.zeros((1, Tp), jnp.float32)

    ba = 1.0 / math.sqrt(ninp)
    bf_ = 1.0 / math.sqrt(nhid)
    qscale = 1.0 / math.sqrt(hd)
    wqkv, wo, w1, b1, w2, b2 = [], [], [], [], [], []
    for _ in range(nlayers):
        w = u(next(ki), (ninp, 3 * ninp), ba)
        w = w.at[:, :ninp].multiply(qscale)      # fold 1/sqrt(hd) into W_q columns
        wqkv.append(w)
        wo.append(u(next(ki), (ninp, ninp), ba).reshape(nhead, hd, ninp))
        w1.append(u(next(ki), (ninp, nhid), ba))
        b1.append(u(next(ki), (1, nhid), ba))
        w2.append(u(next(ki), (nhid, ninp), bf_))
        b2.append(u(next(ki), (1, ninp), bf_))

    L = nlayers
    bf16 = jnp.bfloat16
    return {
        # matmul weights stored bf16 (MXU operands); biases / LN params in f32
        "enc_w": enc_w.astype(bf16),
        "enc_b": enc_b,
        "dec_w": dec_w.astype(bf16),
        "dec_b": dec_b,
        "wqkv": jnp.stack(wqkv).astype(bf16),               # (L, D, 3D)
        "bqkv": jnp.zeros((L, 1, 3 * ninp), jnp.float32),
        "wo":   jnp.stack(wo).astype(bf16),                 # (L, nhead, hd, D)
        "bo":   jnp.zeros((L, 1, ninp), jnp.float32),
        "ln1w": jnp.ones((L, 1, ninp), jnp.float32),
        "ln1b": jnp.zeros((L, 1, ninp), jnp.float32),
        "w1":   jnp.stack(w1).astype(bf16),                 # (L, D, H)
        "b1":   jnp.stack(b1),                              # (L, 1, H)
        "w2":   jnp.stack(w2).astype(bf16),                 # (L, H, D)
        "b2":   jnp.stack(b2),                              # (L, 1, D)
        "ln2w": jnp.ones((L, 1, ninp), jnp.float32),
        "ln2b": jnp.zeros((L, 1, ninp), jnp.float32),
    }


# ------------------------------- main ----------------------------------------

if __name__ == "__main__":
    # small shapes consistent with the module's forward
    S, B = 8, 2            # seq length, batch
    ntoken, ninp = 16, 32  # vocab size, model dim
    nhead, nhid = 4, 64    # heads, FFN hidden dim
    nlayers = 2

    key = jax.random.PRNGKey(0)
    kp, kx = jax.random.split(key)
    params = init_params(kp, ntoken, ninp, nhead, nhid, nlayers)
    src = jax.random.normal(kx, (S, B, ntoken), jnp.float32)   # (S, B, ntoken)

    fwd = jax.jit(functools.partial(transformer_forward,
                                    ninp=ninp, nhead=nhead, nhid=nhid))
    out = fwd(params, src)
    jax.block_until_ready(out)
    assert out.shape == (S, B, ntoken)
    assert bool(jnp.all(jnp.isfinite(out)))
    print("KERNEL_OK")
</pallas_src>

<mosaic_0001>
module attributes {stable_mosaic.version = 11 : i64} {
  func.func @embed_kernel(%arg0: i32, %arg1: memref<1x8x16xf32, #tpu.memory_space<vmem>>, %arg2: memref<8x32xf32, #tpu.memory_space<vmem>>, %arg3: memref<16x32xbf16, #tpu.memory_space<vmem>>, %arg4: memref<1x32xf32, #tpu.memory_space<vmem>>, %arg5: memref<1x8x32xf32, #tpu.memory_space<vmem>>) attributes {dimension_semantics = [#tpu.dimension_semantics<parallel>], iteration_bounds = array<i64: 2>, scalar_prefetch = 0 : i64, scratch_operands = 0 : i64, tpu.core_type = #tpu.core_type<tc>, window_params = [{transform_indices = @transform_0, window_bounds = array<i64: 1, 8, 16>}, {pipeline_mode = #tpu.pipeline_mode<synchronous>, transform_indices = @transform_1, window_bounds = array<i64: 8, 32>}, {pipeline_mode = #tpu.pipeline_mode<synchronous>, transform_indices = @transform_2, window_bounds = array<i64: 16, 32>}, {pipeline_mode = #tpu.pipeline_mode<synchronous>, transform_indices = @transform_3, window_bounds = array<i64: 1, 32>}, {transform_indices = @transform_4, window_bounds = array<i64: 1, 8, 32>}]} {
    %c0 = arith.constant 0 : index
    %c0_0 = arith.constant 0 : index
    %c0_1 = arith.constant 0 : index
    %0 = vector.load %arg1[%c0, %c0_0, %c0_1] : memref<1x8x16xf32, #tpu.memory_space<vmem>>, vector<1x8x16xf32>
    %1 = vector.shape_cast %0 : vector<1x8x16xf32> to vector<8x16xf32>
    %2 = arith.truncf %1 : vector<8x16xf32> to vector<8x16xbf16>
    %c0_2 = arith.constant 0 : index
    %c0_3 = arith.constant 0 : index
    %3 = vector.load %arg3[%c0_2, %c0_3] : memref<16x32xbf16, #tpu.memory_space<vmem>>, vector<16x32xbf16>
    %cst = arith.constant dense<0.000000e+00> : vector<8x32xf32>
    %4 = tpu.matmul %2, %3, %cst {dimension_numbers = #tpu.dot_dimension_numbers<[1], [0], [0], [1], [0, 0, 1, 1], [], []>} : vector<8x16xbf16>, vector<16x32xbf16>, vector<8x32xf32> -> vector<8x32xf32>
    %c0_4 = arith.constant 0 : index
    %c0_5 = arith.constant 0 : index
    %5 = vector.load %arg4[%c0_4, %c0_5] : memref<1x32xf32, #tpu.memory_space<vmem>>, vector<1x32xf32>
    %6 = vector.broadcast %5 : vector<1x32xf32> to vector<8x32xf32>
    %7 = arith.addf %4, %6 : vector<8x32xf32>
    %cst_6 = arith.constant 5.65685415 : f32
    %8 = vector.broadcast %cst_6 : f32 to vector<8x32xf32>
    %9 = arith.mulf %7, %8 : vector<8x32xf32>
    %c0_7 = arith.constant 0 : index
    %c0_8 = arith.constant 0 : index
    %10 = vector.load %arg2[%c0_7, %c0_8] : memref<8x32xf32, #tpu.memory_space<vmem>>, vector<8x32xf32>
    %11 = arith.addf %9, %10 : vector<8x32xf32>
    %c0_9 = arith.constant 0 : index
    %c0_10 = arith.constant 0 : index
    %c0_11 = arith.constant 0 : index
    %12 = vector.load %arg5[%c0_9, %c0_10, %c0_11] : memref<1x8x32xf32, #tpu.memory_space<vmem>>, vector<1x8x32xf32>
    %13 = vector.shape_cast %12 : vector<1x8x32xf32> to vector<8x32xf32>
    %14 = vector.shape_cast %11 : vector<8x32xf32> to vector<1x8x32xf32>
    tpu.vector_store %arg5[%c0_9, %c0_10, %c0_11], %14 {strides = array<i32>} : memref<1x8x32xf32, #tpu.memory_space<vmem>>, vector<1x8x32xf32>,
    return
  }
  func.func @transform_0(%arg0: i32) -> (i32, i32, i32) {
    %c0_i32 = arith.constant 0 : i32
    %c0_i32_0 = arith.constant 0 : i32
    %c0_i32_1 = arith.constant 0 : i32
    return %arg0, %c0_i32, %c0_i32_0 : i32, i32, i32
  }
  func.func @transform_1(%arg0: i32) -> (i32, i32) {
    %c0_i32 = arith.constant 0 : i32
    %c0_i32_0 = arith.constant 0 : i32
    %c0_i32_1 = arith.constant 0 : i32
    return %c0_i32, %c0_i32_0 : i32, i32
  }
  func.func @transform_2(%arg0: i32) -> (i32, i32) {
    %c0_i32 = arith.constant 0 : i32
    %c0_i32_0 = arith.constant 0 : i32
    %c0_i32_1 = arith.constant 0 : i32
    return %c0_i32, %c0_i32_0 : i32, i32
  }
  func.func @transform_3(%arg0: i32) -> (i32, i32) {
    %c0_i32 = arith.constant 0 : i32
    %c0_i32_0 = arith.constant 0 : i32
    %c0_i32_1 = arith.constant 0 : i32
    return %c0_i32, %c0_i32_0 : i32, i32
  }
  func.func @transform_4(%arg0: i32) -> (i32, i32, i32) {
    %c0_i32 = arith.constant 0 : i32
    %c0_i32_0 = arith.constant 0 : i32
    %c0_i32_1 = arith.constant 0 : i32
    return %arg0, %c0_i32, %c0_i32_0 : i32, i32, i32
  }
}

module attributes {stable_mosaic.version = 11 : i64} {
  func.func @decode_kernel(%arg0: i32, %arg1: i32, %arg2: memref<16x32xf32, #tpu.memory_space<vmem>>, %arg3: memref<32x128xbf16, #tpu.memory_space<vmem>>, %arg4: memref<1x128xf32, #tpu.memory_space<vmem>>, %arg5: memref<16x128xf32, #tpu.memory_space<vmem>>) attributes {dimension_semantics = [#tpu.dimension_semantics<parallel>, #tpu.dimension_semantics<parallel>], iteration_bounds = array<i64: 1, 1>, scalar_prefetch = 0 : i64, scratch_operands = 0 : i64, tpu.core_type = #tpu.core_type<tc>, window_params = [{transform_indices = @transform_0, window_bounds = array<i64: 16, 32>}, {transform_indices = @transform_1, window_bounds = array<i64: 32, 128>}, {transform_indices = @transform_2, window_bounds = array<i64: 1, 128>}, {transform_indices = @transform_3, window_bounds = array<i64: 16, 128>}]} {
    %c0 = arith.constant 0 : index
    %c0_0 = arith.constant 0 : index
    %0 = vector.load %arg2[%c0, %c0_0] : memref<16x32xf32, #tpu.memory_space<vmem>>, vector<16x32xf32>
    %1 = arith.truncf %0 : vector<16x32xf32> to vector<16x32xbf16>
    %c0_1 = arith.constant 0 : index
    %c0_2 = arith.constant 0 : index
    %2 = vector.load %arg3[%c0_1, %c0_2] : memref<32x128xbf16, #tpu.memory_space<vmem>>, vector<32x128xbf16>
    %cst = arith.constant dense<0.000000e+00> : vector<16x128xf32>
    %3 = tpu.matmul %1, %2, %cst {dimension_numbers = #tpu.dot_dimension_numbers<[1], [0], [0], [1], [0, 0, 1, 1], [], []>} : vector<16x32xbf16>, vector<32x128xbf16>, vector<16x128xf32> -> vector<16x128xf32>
    %c0_3 = arith.constant 0 : index
    %c0_4 = arith.constant 0 : index
    %4 = vector.load %arg4[%c0_3, %c0_4] : memref<1x128xf32, #tpu.memory_space<vmem>>, vector<1x128xf32>
    %5 = vector.broadcast %4 : vector<1x128xf32> to vector<16x128xf32>
    %6 = arith.addf %3, %5 : vector<16x128xf32>
    %c0_5 = arith.constant 0 : index
    %c0_6 = arith.constant 0 : index
    %7 = vector.load %arg5[%c0_5, %c0_6] : memref<16x128xf32, #tpu.memory_space<vmem>>, vector<16x128xf32>
    tpu.vector_store %arg5[%c0_5, %c0_6], %6 {strides = array<i32>} : memref<16x128xf32, #tpu.memory_space<vmem>>, vector<16x128xf32>,
    return
  }
  func.func @transform_0(%arg0: i32, %arg1: i32) -> (i32, i32) {
    %c0_i32 = arith.constant 0 : i32
    %c0_i32_0 = arith.constant 0 : i32
    return %arg0, %c0_i32 : i32, i32
  }
  func.func @transform_1(%arg0: i32, %arg1: i32) -> (i32, i32) {
    %c0_i32 = arith.constant 0 : i32
    %c0_i32_0 = arith.constant 0 : i32
    return %c0_i32, %arg1 : i32, i32
  }
  func.func @transform_2(%arg0: i32, %arg1: i32) -> (i32, i32) {
    %c0_i32 = arith.constant 0 : i32
    %c0_i32_0 = arith.constant 0 : i32
    return %c0_i32, %arg1 : i32, i32
  }
  func.func @transform_3(%arg0: i32, %arg1: i32) -> (i32, i32) {
    %c0_i32 = arith.constant 0 : i32
    return %arg0, %arg1 : i32, i32
  }
}

module attributes {stable_mosaic.version = 11 : i64} {
  func.func @layer_kernel(%arg0: i32, %arg1: i32, %arg2: memref<1x8x32xf32, #tpu.memory_space<vmem>>, %arg3: memref<1x32x96xbf16, #tpu.memory_space<vmem>>, %arg4: memref<1x1x96xf32, #tpu.memory_space<vmem>>, %arg5: memref<1x4x8x32xbf16, #tpu.memory_space<vmem>>, %arg6: memref<1x1x32xf32, #tpu.memory_space<vmem>>, %arg7: memref<1x1x32xf32, #tpu.memory_space<vmem>>, %arg8: memref<1x1x32xf32, #tpu.memory_space<vmem>>, %arg9: memref<1x32x64xbf16, #tpu.memory_space<vmem>>, %arg10: memref<1x1x64xf32, #tpu.memory_space<vmem>>, %arg11: memref<1x64x32xbf16, #tpu.memory_space<vmem>>, %arg12: memref<1x1x32xf32, #tpu.memory_space<vmem>>, %arg13: memref<1x1x32xf32, #tpu.memory_space<vmem>>, %arg14: memref<1x1x32xf32, #tpu.memory_space<vmem>>, %arg15: memref<1x8x32xf32, #tpu.memory_space<vmem>>, %arg16: memref<8x32xf32, #tpu.memory_space<vmem>>) attributes {dimension_semantics = [#tpu.dimension_semantics<parallel>, #tpu.dimension_semantics<arbitrary>], iteration_bounds = array<i64: 2, 2>, scalar_prefetch = 0 : i64, scratch_operands = 1 : i64, tpu.core_type = #tpu.core_type<tc>, window_params = [{transform_indices = @transform_0, window_bounds = array<i64: 1, 8, 32>}, {transform_indices = @transform_1, window_bounds = array<i64: 1, 32, 96>}, {transform_indices = @transform_2, window_bounds = array<i64: 1, 1, 96>}, {transform_indices = @transform_3, window_bounds = array<i64: 1, 4, 8, 32>}, {transform_indices = @transform_4, window_bounds = array<i64: 1, 1, 32>}, {transform_indices = @transform_5, window_bounds = array<i64: 1, 1, 32>}, {transform_indices = @transform_6, window_bounds = array<i64: 1, 1, 32>}, {transform_indices = @transform_7, window_bounds = array<i64: 1, 32, 64>}, {transform_indices = @transform_8, window_bounds = array<i64: 1, 1, 64>}, {transform_indices = @transform_9, window_bounds = array<i64: 1, 64, 32>}, {transform_indices = @transform_10, window_bounds = array<i64: 1, 1, 32>}, {transform_indices = @transform_11, window_bounds = array<i64: 1, 1, 32>}, {transform_indices = @transform_12, window_bounds = array<i64: 1, 1, 32>}, {transform_indices = @transform_13, window_bounds = array<i64: 1, 8, 32>}]} {
    %c0_i32 = arith.constant 0 : i32
    %0 = arith.cmpi eq, %arg1, %c0_i32 : i32
    %1 = arith.extui %0 : i1 to i32
    %c0_i32_0 = arith.constant 0 : i32
    %2 = arith.cmpi ne, %1, %c0_i32_0 : i32
    scf.if %2 {
      %c0_88 = arith.constant 0 : index
      %c0_89 = arith.constant 0 : index
      %c0_90 = arith.constant 0 : index
      %204 = vector.load %arg2[%c0_88, %c0_89, %c0_90] : memref<1x8x32xf32, #tpu.memory_space<vmem>>, vector<1x8x32xf32>
      %205 = vector.shape_cast %204 : vector<1x8x32xf32> to vector<8x32xf32>
      %c0_91 = arith.constant 0 : index
      %c0_92 = arith.constant 0 : index
      %206 = vector.load %arg16[%c0_91, %c0_92] : memref<8x32xf32, #tpu.memory_space<vmem>>, vector<8x32xf32>
      tpu.vector_store %arg16[%c0_91, %c0_92], %205 {strides = array<i32>} : memref<8x32xf32, #tpu.memory_space<vmem>>, vector<8x32xf32>,
    } else {
    }
    %c0 = arith.constant 0 : index
    %c0_1 = arith.constant 0 : index
    %3 = vector.load %arg16[%c0, %c0_1] : memref<8x32xf32, #tpu.memory_space<vmem>>, vector<8x32xf32>
    %4 = arith.truncf %3 : vector<8x32xf32> to vector<8x32xbf16>
    %c0_2 = arith.constant 0 : index
    %c0_3 = arith.constant 0 : index
    %c0_4 = arith.constant 0 : index
    %5 = vector.load %arg3[%c0_2, %c0_3, %c0_4] : memref<1x32x96xbf16, #tpu.memory_space<vmem>>, vector<1x32x96xbf16>
    %6 = vector.shape_cast %5 : vector<1x32x96xbf16> to vector<32x96xbf16>
    %cst = arith.constant dense<0.000000e+00> : vector<8x96xf32>
    %7 = tpu.matmul %4, %6, %cst {dimension_numbers = #tpu.dot_dimension_numbers<[1], [0], [0], [1], [0, 0, 1, 1], [], []>} : vector<8x32xbf16>, vector<32x96xbf16>, vector<8x96xf32> -> vector<8x96xf32>
    %c0_5 = arith.constant 0 : index
    %c0_6 = arith.constant 0 : index
    %c0_7 = arith.constant 0 : index
    %8 = vector.load %arg4[%c0_5, %c0_6, %c0_7] : memref<1x1x96xf32, #tpu.memory_space<vmem>>, vector<1x1x96xf32>
    %9 = vector.shape_cast %8 : vector<1x1x96xf32> to vector<1x96xf32>
    %10 = vector.broadcast %9 : vector<1x96xf32> to vector<8x96xf32>
    %11 = arith.addf %7, %10 : vector<8x96xf32>
    %12 = vector.extract_strided_slice %11 {offsets = [0, 0], sizes = [8, 32], strides = [1, 1]} : vector<8x96xf32> to vector<8x32xf32>
    %13 = vector.extract_strided_slice %11 {offsets = [0, 32], sizes = [8, 32], strides = [1, 1]} : vector<8x96xf32> to vector<8x32xf32>
    %14 = vector.extract_strided_slice %11 {offsets = [0, 64], sizes = [8, 32], strides = [1, 1]} : vector<8x96xf32> to vector<8x32xf32>
    %15 = tpu.iota {dimensions = array<i32: 0>} : vector<8x8xi32>
    %c0_i32_8 = arith.constant 0 : i32
    %16 = vector.broadcast %c0_i32_8 : i32 to vector<8x8xi32>
    %17 = arith.addi %15, %16 : vector<8x8xi32>
    %18 = tpu.iota {dimensions = array<i32: 1>} : vector<8x8xi32>
    %19 = arith.cmpi sle, %18, %17 : vector<8x8xi32>
    %cst_9 = arith.constant 0.000000e+00 : f32
    %cst_10 = arith.constant -1.000000e+30 : f32
    %20 = vector.broadcast %cst_9 : f32 to vector<8x8xf32>
    %21 = vector.broadcast %cst_10 : f32 to vector<8x8xf32>
    %22 = arith.select %19, %20, %21 : vector<8x8xi1>, vector<8x8xf32>
    %cst_11 = arith.constant 0.000000e+00 : f32
    %23 = vector.broadcast %cst_11 : f32 to vector<8x32xf32>
    %c0_12 = arith.constant 0 : index
    %c0_13 = arith.constant 0 : index
    %c0_14 = arith.constant 0 : index
    %24 = vector.load %arg6[%c0_12, %c0_13, %c0_14] : memref<1x1x32xf32, #tpu.memory_space<vmem>>, vector<1x1x32xf32>
    %25 = vector.shape_cast %24 : vector<1x1x32xf32> to vector<1x32xf32>
    %26 = vector.broadcast %25 : vector<1x32xf32> to vector<8x32xf32>
    %27 = arith.addf %23, %26 : vector<8x32xf32>
    %28 = vector.extract_strided_slice %12 {offsets = [0, 0], sizes = [8, 8], strides = [1, 1]} : vector<8x32xf32> to vector<8x8xf32>
    %29 = arith.truncf %28 : vector<8x8xf32> to vector<8x8xbf16>
    %30 = vector.extract_strided_slice %13 {offsets = [0, 0], sizes = [8, 8], strides = [1, 1]} : vector<8x32xf32> to vector<8x8xf32>
    %31 = arith.truncf %30 : vector<8x8xf32> to vector<8x8xbf16>
    %32 = vector.extract_strided_slice %14 {offsets = [0, 0], sizes = [8, 8], strides = [1, 1]} : vector<8x32xf32> to vector<8x8xf32>
    %33 = arith.truncf %32 : vector<8x8xf32> to vector<8x8xbf16>
    %cst_15 = arith.constant dense<0.000000e+00> : vector<8x8xf32>
    %34 = tpu.matmul %29, %31, %cst_15 {dimension_numbers = #tpu.dot_dimension_numbers<[1], [1], [0], [0], [0, 0, 1, 0], [], []>} : vector<8x8xbf16>, vector<8x8xbf16>, vector<8x8xf32> -> vector<8x8xf32>
    %35 = arith.addf %34, %22 : vector<8x8xf32>
    %cst_16 = arith.constant dense<0xFF800000> : vector<8xf32>
    %36 = vector.multi_reduction <maximumf>, %35, %cst_16 [1] : vector<8x8xf32> to vector<8xf32>
    %37 = vector.shape_cast %36 : vector<8xf32> to vector<8x1xf32>
    %38 = vector.broadcast %37 : vector<8x1xf32> to vector<8x8xf32>
    %39 = arith.subf %35, %38 : vector<8x8xf32>
    %40 = math.exp %39 : vector<8x8xf32>
    %cst_17 = arith.constant dense<0.000000e+00> : vector<8xf32>
    %41 = vector.multi_reduction <add>, %40, %cst_17 [1] : vector<8x8xf32> to vector<8xf32>
    %42 = vector.shape_cast %41 : vector<8xf32> to vector<8x1xf32>
    %43 = tpu.reciprocal %42 {approx = true} : vector<8x1xf32> -> vector<8x1xf32>
    %44 = vector.broadcast %43 : vector<8x1xf32> to vector<8x8xf32>
    %45 = arith.mulf %40, %44 : vector<8x8xf32>
    %46 = arith.truncf %45 : vector<8x8xf32> to vector<8x8xbf16>
    %cst_18 = arith.constant dense<0.000000e+00> : vector<8x8xf32>
    %47 = tpu.matmul %46, %33, %cst_18 {dimension_numbers = #tpu.dot_dimension_numbers<[1], [0], [0], [1], [0, 0, 1, 1], [], []>} : vector<8x8xbf16>, vector<8x8xbf16>, vector<8x8xf32> -> vector<8x8xf32>
    %48 = arith.truncf %47 : vector<8x8xf32> to vector<8x8xbf16>
    %c0_19 = arith.constant 0 : index
    %c0_20 = arith.constant 0 : index
    %c0_21 = arith.constant 0 : index
    %c0_22 = arith.constant 0 : index
    %49 = vector.load %arg5[%c0_19, %c0_20, %c0_21, %c0_22] : memref<1x4x8x32xbf16, #tpu.memory_space<vmem>>, vector<1x1x8x32xbf16>
    %50 = vector.shape_cast %49 : vector<1x1x8x32xbf16> to vector<8x32xbf16>
    %cst_23 = arith.constant dense<0.000000e+00> : vector<8x32xf32>
    %51 = tpu.matmul %48, %50, %cst_23 {dimension_numbers = #tpu.dot_dimension_numbers<[1], [0], [0], [1], [0, 0, 1, 1], [], []>} : vector<8x8xbf16>, vector<8x32xbf16>, vector<8x32xf32> -> vector<8x32xf32>
    %52 = arith.addf %27, %51 : vector<8x32xf32>
    %53 = vector.extract_strided_slice %12 {offsets = [0, 8], sizes = [8, 8], strides = [1, 1]} : vector<8x32xf32> to vector<8x8xf32>
    %54 = arith.truncf %53 : vector<8x8xf32> to vector<8x8xbf16>
    %55 = vector.extract_strided_slice %13 {offsets = [0, 8], sizes = [8, 8], strides = [1, 1]} : vector<8x32xf32> to vector<8x8xf32>
    %56 = arith.truncf %55 : vector<8x8xf32> to vector<8x8xbf16>
    %57 = vector.extract_strided_slice %14 {offsets = [0, 8], sizes = [8, 8], strides = [1, 1]} : vector<8x32xf32> to vector<8x8xf32>
    %58 = arith.truncf %57 : vector<8x8xf32> to vector<8x8xbf16>
    %cst_24 = arith.constant dense<0.000000e+00> : vector<8x8xf32>
    %59 = tpu.matmul %54, %56, %cst_24 {dimension_numbers = #tpu.dot_dimension_numbers<[1], [1], [0], [0], [0, 0, 1, 0], [], []>} : vector<8x8xbf16>, vector<8x8xbf16>, vector<8x8xf32> -> vector<8x8xf32>
    %60 = arith.addf %59, %22 : vector<8x8xf32>
    %cst_25 = arith.constant dense<0xFF800000> : vector<8xf32>
    %61 = vector.multi_reduction <maximumf>, %60, %cst_25 [1] : vector<8x8xf32> to vector<8xf32>
    %62 = vector.shape_cast %61 : vector<8xf32> to vector<8x1xf32>
    %63 = vector.broadcast %62 : vector<8x1xf32> to vector<8x8xf32>
    %64 = arith.subf %60, %63 : vector<8x8xf32>
    %65 = math.exp %64 : vector<8x8xf32>
    %cst_26 = arith.constant dense<0.000000e+00> : vector<8xf32>
    %66 = vector.multi_reduction <add>, %65, %cst_26 [1] : vector<8x8xf32> to vector<8xf32>
    %67 = vector.shape_cast %66 : vector<8xf32> to vector<8x1xf32>
    %68 = tpu.reciprocal %67 {approx = true} : vector<8x1xf32> -> vector<8x1xf32>
    %69 = vector.broadcast %68 : vector<8x1xf32> to vector<8x8xf32>
    %70 = arith.mulf %65, %69 : vector<8x8xf32>
    %71 = arith.truncf %70 : vector<8x8xf32> to vector<8x8xbf16>
    %cst_27 = arith.constant dense<0.000000e+00> : vector<8x8xf32>
    %72 = tpu.matmul %71, %58, %cst_27 {dimension_numbers = #tpu.dot_dimension_numbers<[1], [0], [0], [1], [0, 0, 1, 1], [], []>} : vector<8x8xbf16>, vector<8x8xbf16>, vector<8x8xf32> -> vector<8x8xf32>
    %73 = arith.truncf %72 : vector<8x8xf32> to vector<8x8xbf16>
    %c0_28 = arith.constant 0 : index
    %c1 = arith.constant 1 : index
    %c0_29 = arith.constant 0 : index
    %c0_30 = arith.constant 0 : index
    %74 = vector.load %arg5[%c0_28, %c1, %c0_29, %c0_30] : memref<1x4x8x32xbf16, #tpu.memory_space<vmem>>, vector<1x1x8x32xbf16>
    %75 = vector.shape_cast %74 : vector<1x1x8x32xbf16> to vector<8x32xbf16>
    %cst_31 = arith.constant dense<0.000000e+00> : vector<8x32xf32>
    %76 = tpu.matmul %73, %75, %cst_31 {dimension_numbers = #tpu.dot_dimension_numbers<[1], [0], [0], [1], [0, 0, 1, 1], [], []>} : vector<8x8xbf16>, vector<8x32xbf16>, vector<8x32xf32> -> vector<8x32xf32>
    %77 = arith.addf %52, %76 : vector<8x32xf32>
    %78 = vector.extract_strided_slice %12 {offsets = [0, 16], sizes = [8, 8], strides = [1, 1]} : vector<8x32xf32> to vector<8x8xf32>
    %79 = arith.truncf %78 : vector<8x8xf32> to vector<8x8xbf16>
    %80 = vector.extract_strided_slice %13 {offsets = [0, 16], sizes = [8, 8], strides = [1, 1]} : vector<8x32xf32> to vector<8x8xf32>
    %81 = arith.truncf %80 : vector<8x8xf32> to vector<8x8xbf16>
    %82 = vector.extract_strided_slice %14 {offsets = [0, 16], sizes = [8, 8], strides = [1, 1]} : vector<8x32xf32> to vector<8x8xf32>
    %83 = arith.truncf %82 : vector<8x8xf32> to vector<8x8xbf16>
    %cst_32 = arith.constant dense<0.000000e+00> : vector<8x8xf32>
    %84 = tpu.matmul %79, %81, %cst_32 {dimension_numbers = #tpu.dot_dimension_numbers<[1], [1], [0], [0], [0, 0, 1, 0], [], []>} : vector<8x8xbf16>, vector<8x8xbf16>, vector<8x8xf32> -> vector<8x8xf32>
    %85 = arith.addf %84, %22 : vector<8x8xf32>
    %cst_33 = arith.constant dense<0xFF800000> : vector<8xf32>
    %86 = vector.multi_reduction <maximumf>, %85, %cst_33 [1] : vector<8x8xf32> to vector<8xf32>
    %87 = vector.shape_cast %86 : vector<8xf32> to vector<8x1xf32>
    %88 = vector.broadcast %87 : vector<8x1xf32> to vector<8x8xf32>
    %89 = arith.subf %85, %88 : vector<8x8xf32>
    %90 = math.exp %89 : vector<8x8xf32>
    %cst_34 = arith.constant dense<0.000000e+00> : vector<8xf32>
    %91 = vector.multi_reduction <add>, %90, %cst_34 [1] : vector<8x8xf32> to vector<8xf32>
    %92 = vector.shape_cast %91 : vector<8xf32> to vector<8x1xf32>
    %93 = tpu.reciprocal %92 {approx = true} : vector<8x1xf32> -> vector<8x1xf32>
    %94 = vector.broadcast %93 : vector<8x1xf32> to vector<8x8xf32>
    %95 = arith.mulf %90, %94 : vector<8x8xf32>
    %96 = arith.truncf %95 : vector<8x8xf32> to vector<8x8xbf16>
    %cst_35 = arith.constant dense<0.000000e+00> : vector<8x8xf32>
    %97 = tpu.matmul %96, %83, %cst_35 {dimension_numbers = #tpu.dot_dimension_numbers<[1], [0], [0], [1], [0, 0, 1, 1], [], []>} : vector<8x8xbf16>, vector<8x8xbf16>, vector<8x8xf32> -> vector<8x8xf32>
    %98 = arith.truncf %97 : vector<8x8xf32> to vector<8x8xbf16>
    %c0_36 = arith.constant 0 : index
    %c2 = arith.constant 2 : index
    %c0_37 = arith.constant 0 : index
    %c0_38 = arith.constant 0 : index
    %99 = vector.load %arg5[%c0_36, %c2, %c0_37, %c0_38] : memref<1x4x8x32xbf16, #tpu.memory_space<vmem>>, vector<1x1x8x32xbf16>
    %100 = vector.shape_cast %99 : vector<1x1x8x32xbf16> to vector<8x32xbf16>
    %cst_39 = arith.constant dense<0.000000e+00> : vector<8x32xf32>
    %101 = tpu.matmul %98, %100, %cst_39 {dimension_numbers = #tpu.dot_dimension_numbers<[1], [0], [0], [1], [0, 0, 1, 1], [], []>} : vector<8x8xbf16>, vector<8x32xbf16>, vector<8x32xf32> -> vector<8x32xf32>
    %102 = arith.addf %77, %101 : vector<8x32xf32>
    %103 = vector.extract_strided_slice %12 {offsets = [0, 24], sizes = [8, 8], strides = [1, 1]} : vector<8x32xf32> to vector<8x8xf32>
    %104 = arith.truncf %103 : vector<8x8xf32> to vector<8x8xbf16>
    %105 = vector.extract_strided_slice %13 {offsets = [0, 24], sizes = [8, 8], strides = [1, 1]} : vector<8x32xf32> to vector<8x8xf32>
    %106 = arith.truncf %105 : vector<8x8xf32> to vector<8x8xbf16>
    %107 = vector.extract_strided_slice %14 {offsets = [0, 24], sizes = [8, 8], strides = [1, 1]} : vector<8x32xf32> to vector<8x8xf32>
    %108 = arith.truncf %107 : vector<8x8xf32> to vector<8x8xbf16>
    %cst_40 = arith.constant dense<0.000000e+00> : vector<8x8xf32>
    %109 = tpu.matmul %104, %106, %cst_40 {dimension_numbers = #tpu.dot_dimension_numbers<[1], [1], [0], [0], [0, 0, 1, 0], [], []>} : vector<8x8xbf16>, vector<8x8xbf16>, vector<8x8xf32> -> vector<8x8xf32>
    %110 = arith.addf %109, %22 : vector<8x8xf32>
    %cst_41 = arith.constant dense<0xFF800000> : vector<8xf32>
    %111 = vector.multi_reduction <maximumf>, %110, %cst_41 [1] : vector<8x8xf32> to vector<8xf32>
    %112 = vector.shape_cast %111 : vector<8xf32> to vector<8x1xf32>
    %113 = vector.broadcast %112 : vector<8x1xf32> to vector<8x8xf32>
    %114 = arith.subf %110, %113 : vector<8x8xf32>
    %115 = math.exp %114 : vector<8x8xf32>
    %cst_42 = arith.constant dense<0.000000e+00> : vector<8xf32>
    %116 = vector.multi_reduction <add>, %115, %cst_42 [1] : vector<8x8xf32> to vector<8xf32>
    %117 = vector.shape_cast %116 : vector<8xf32> to vector<8x1xf32>
    %118 = tpu.reciprocal %117 {approx = true} : vector<8x1xf32> -> vector<8x1xf32>
    %119 = vector.broadcast %118 : vector<8x1xf32> to vector<8x8xf32>
    %120 = arith.mulf %115, %119 : vector<8x8xf32>
    %121 = arith.truncf %120 : vector<8x8xf32> to vector<8x8xbf16>
    %cst_43 = arith.constant dense<0.000000e+00> : vector<8x8xf32>
    %122 = tpu.matmul %121, %108, %cst_43 {dimension_numbers = #tpu.dot_dimension_numbers<[1], [0], [0], [1], [0, 0, 1, 1], [], []>} : vector<8x8xbf16>, vector<8x8xbf16>, vector<8x8xf32> -> vector<8x8xf32>
    %123 = arith.truncf %122 : vector<8x8xf32> to vector<8x8xbf16>
    %c0_44 = arith.constant 0 : index
    %c3 = arith.constant 3 : index
    %c0_45 = arith.constant 0 : index
    %c0_46 = arith.constant 0 : index
    %124 = vector.load %arg5[%c0_44, %c3, %c0_45, %c0_46] : memref<1x4x8x32xbf16, #tpu.memory_space<vmem>>, vector<1x1x8x32xbf16>
    %125 = vector.shape_cast %124 : vector<1x1x8x32xbf16> to vector<8x32xbf16>
    %cst_47 = arith.constant dense<0.000000e+00> : vector<8x32xf32>
    %126 = tpu.matmul %123, %125, %cst_47 {dimension_numbers = #tpu.dot_dimension_numbers<[1], [0], [0], [1], [0, 0, 1, 1], [], []>} : vector<8x8xbf16>, vector<8x32xbf16>, vector<8x32xf32> -> vector<8x32xf32>
    %127 = arith.addf %102, %126 : vector<8x32xf32>
    %128 = arith.addf %3, %127 : vector<8x32xf32>
    %c0_48 = arith.constant 0 : index
    %c0_49 = arith.constant 0 : index
    %c0_50 = arith.constant 0 : index
    %129 = vector.load %arg7[%c0_48, %c0_49, %c0_50] : memref<1x1x32xf32, #tpu.memory_space<vmem>>, vector<1x1x32xf32>
    %130 = vector.shape_cast %129 : vector<1x1x32xf32> to vector<1x32xf32>
    %c0_51 = arith.constant 0 : index
    %c0_52 = arith.constant 0 : index
    %c0_53 = arith.constant 0 : index
    %131 = vector.load %arg8[%c0_51, %c0_52, %c0_53] : memref<1x1x32xf32, #tpu.memory_space<vmem>>, vector<1x1x32xf32>
    %132 = vector.shape_cast %131 : vector<1x1x32xf32> to vector<1x32xf32>
    %cst_54 = arith.constant dense<0.000000e+00> : vector<8xf32>
    %133 = vector.multi_reduction <add>, %128, %cst_54 [1] : vector<8x32xf32> to vector<8xf32>
    %134 = vector.shape_cast %133 : vector<8xf32> to vector<8x1xf32>
    %cst_55 = arith.constant 3.200000e+01 : f32
    %135 = vector.broadcast %cst_55 : f32 to vector<8x1xf32>
    %136 = arith.divf %134, %135 : vector<8x1xf32>
    %137 = vector.broadcast %136 : vector<8x1xf32> to vector<8x32xf32>
    %138 = arith.subf %128, %137 : vector<8x32xf32>
    %139 = arith.mulf %138, %138 : vector<8x32xf32>
    %cst_56 = arith.constant dense<0.000000e+00> : vector<8xf32>
    %140 = vector.multi_reduction <add>, %139, %cst_56 [1] : vector<8x32xf32> to vector<8xf32>
    %141 = vector.shape_cast %140 : vector<8xf32> to vector<8x1xf32>
    %cst_57 = arith.constant 3.200000e+01 : f32
    %142 = vector.broadcast %cst_57 : f32 to vector<8x1xf32>
    %143 = arith.divf %141, %142 : vector<8x1xf32>
    %144 = vector.broadcast %136 : vector<8x1xf32> to vector<8x32xf32>
    %145 = arith.subf %128, %144 : vector<8x32xf32>
    %cst_58 = arith.constant 9.99999974E-6 : f32
    %146 = vector.broadcast %cst_58 : f32 to vector<8x1xf32>
    %147 = arith.addf %143, %146 : vector<8x1xf32>
    %148 = math.rsqrt %147 : vector<8x1xf32>
    %149 = vector.broadcast %148 : vector<8x1xf32> to vector<8x32xf32>
    %150 = arith.mulf %145, %149 : vector<8x32xf32>
    %151 = vector.broadcast %130 : vector<1x32xf32> to vector<8x32xf32>
    %152 = arith.mulf %150, %151 : vector<8x32xf32>
    %153 = vector.broadcast %132 : vector<1x32xf32> to vector<8x32xf32>
    %154 = arith.addf %152, %153 : vector<8x32xf32>
    %155 = arith.truncf %154 : vector<8x32xf32> to vector<8x32xbf16>
    %c0_59 = arith.constant 0 : index
    %c0_60 = arith.constant 0 : index
    %c0_61 = arith.constant 0 : index
    %156 = vector.load %arg9[%c0_59, %c0_60, %c0_61] : memref<1x32x64xbf16, #tpu.memory_space<vmem>>, vector<1x32x64xbf16>
    %157 = vector.shape_cast %156 : vector<1x32x64xbf16> to vector<32x64xbf16>
    %cst_62 = arith.constant dense<0.000000e+00> : vector<8x64xf32>
    %158 = tpu.matmul %155, %157, %cst_62 {dimension_numbers = #tpu.dot_dimension_numbers<[1], [0], [0], [1], [0, 0, 1, 1], [], []>} : vector<8x32xbf16>, vector<32x64xbf16>, vector<8x64xf32> -> vector<8x64xf32>
    %c0_63 = arith.constant 0 : index
    %c0_64 = arith.constant 0 : index
    %c0_65 = arith.constant 0 : index
    %159 = vector.load %arg10[%c0_63, %c0_64, %c0_65] : memref<1x1x64xf32, #tpu.memory_space<vmem>>, vector<1x1x64xf32>
    %160 = vector.shape_cast %159 : vector<1x1x64xf32> to vector<1x64xf32>
    %161 = vector.broadcast %160 : vector<1x64xf32> to vector<8x64xf32>
    %162 = arith.addf %158, %161 : vector<8x64xf32>
    %cst_66 = arith.constant 0.000000e+00 : f32
    %163 = vector.broadcast %cst_66 : f32 to vector<8x64xf32>
    %164 = arith.maximumf %162, %163 : vector<8x64xf32>
    %165 = arith.truncf %164 : vector<8x64xf32> to vector<8x64xbf16>
    %c0_67 = arith.constant 0 : index
    %c0_68 = arith.constant 0 : index
    %c0_69 = arith.constant 0 : index
    %166 = vector.load %arg11[%c0_67, %c0_68, %c0_69] : memref<1x64x32xbf16, #tpu.memory_space<vmem>>, vector<1x64x32xbf16>
    %167 = vector.shape_cast %166 : vector<1x64x32xbf16> to vector<64x32xbf16>
    %cst_70 = arith.constant dense<0.000000e+00> : vector<8x32xf32>
    %168 = tpu.matmul %165, %167, %cst_70 {dimension_numbers = #tpu.dot_dimension_numbers<[1], [0], [0], [1], [0, 0, 1, 1], [], []>} : vector<8x64xbf16>, vector<64x32xbf16>, vector<8x32xf32> -> vector<8x32xf32>
    %c0_71 = arith.constant 0 : index
    %c0_72 = arith.constant 0 : index
    %c0_73 = arith.constant 0 : index
    %169 = vector.load %arg12[%c0_71, %c0_72, %c0_73] : memref<1x1x32xf32, #tpu.memory_space<vmem>>, vector<1x1x32xf32>
    %170 = vector.shape_cast %169 : vector<1x1x32xf32> to vector<1x32xf32>
    %171 = vector.broadcast %170 : vector<1x32xf32> to vector<8x32xf32>
    %172 = arith.addf %168, %171 : vector<8x32xf32>
    %173 = arith.addf %154, %172 : vector<8x32xf32>
    %c0_74 = arith.constant 0 : index
    %c0_75 = arith.constant 0 : index
    %c0_76 = arith.constant 0 : index
    %174 = vector.load %arg13[%c0_74, %c0_75, %c0_76] : memref<1x1x32xf32, #tpu.memory_space<vmem>>, vector<1x1x32xf32>
    %175 = vector.shape_cast %174 : vector<1x1x32xf32> to vector<1x32xf32>
    %c0_77 = arith.constant 0 : index
    %c0_78 = arith.constant 0 : index
    %c0_79 = arith.constant 0 : index
    %176 = vector.load %arg14[%c0_77, %c0_78, %c0_79] : memref<1x1x32xf32, #tpu.memory_space<vmem>>, vector<1x1x32xf32>
    %177 = vector.shape_cast %176 : vector<1x1x32xf32> to vector<1x32xf32>
    %cst_80 = arith.constant dense<0.000000e+00> : vector<8xf32>
    %178 = vector.multi_reduction <add>, %173, %cst_80 [1] : vector<8x32xf32> to vector<8xf32>
    %179 = vector.shape_cast %178 : vector<8xf32> to vector<8x1xf32>
    %cst_81 = arith.constant 3.200000e+01 : f32
    %180 = vector.broadcast %cst_81 : f32 to vector<8x1xf32>
    %181 = arith.divf %179, %180 : vector<8x1xf32>
    %182 = vector.broadcast %181 : vector<8x1xf32> to vector<8x32xf32>
    %183 = arith.subf %173, %182 : vector<8x32xf32>
    %184 = arith.mulf %183, %183 : vector<8x32xf32>
    %cst_82 = arith.constant dense<0.000000e+00> : vector<8xf32>
    %185 = vector.multi_reduction <add>, %184, %cst_82 [1] : vector<8x32xf32> to vector<8xf32>
    %186 = vector.shape_cast %185 : vector<8xf32> to vector<8x1xf32>
    %cst_83 = arith.constant 3.200000e+01 : f32
    %187 = vector.broadcast %cst_83 : f32 to vector<8x1xf32>
    %188 = arith.divf %186, %187 : vector<8x1xf32>
    %189 = vector.broadcast %181 : vector<8x1xf32> to vector<8x32xf32>
    %190 = arith.subf %173, %189 : vector<8x32xf32>
    %cst_84 = arith.constant 9.99999974E-6 : f32
    %191 = vector.broadcast %cst_84 : f32 to vector<8x1xf32>
    %192 = arith.addf %188, %191 : vector<8x1xf32>
    %193 = math.rsqrt %192 : vector<8x1xf32>
    %194 = vector.broadcast %193 : vector<8x1xf32> to vector<8x32xf32>
    %195 = arith.mulf %190, %194 : vector<8x32xf32>
    %196 = vector.broadcast %175 : vector<1x32xf32> to vector<8x32xf32>
    %197 = arith.mulf %195, %196 : vector<8x32xf32>
    %198 = vector.broadcast %177 : vector<1x32xf32> to vector<8x32xf32>
    %199 = arith.addf %197, %198 : vector<8x32xf32>
    %c0_85 = arith.constant 0 : index
    %c0_86 = arith.constant 0 : index
    %200 = vector.load %arg16[%c0_85, %c0_86] : memref<8x32xf32, #tpu.memory_space<vmem>>, vector<8x32xf32>
    tpu.vector_store %arg16[%c0_85, %c0_86], %199 {strides = array<i32>} : memref<8x32xf32, #tpu.memory_space<vmem>>, vector<8x32xf32>,
    %c1_i32 = arith.constant 1 : i32
    %201 = arith.cmpi eq, %arg1, %c1_i32 : i32
    %202 = arith.extui %201 : i1 to i32
    %c0_i32_87 = arith.constant 0 : i32
    %203 = arith.cmpi ne, %202, %c0_i32_87 : i32
    scf.if %203 {
      %c0_88 = arith.constant 0 : index
      %c0_89 = arith.constant 0 : index
      %204 = vector.load %arg16[%c0_88, %c0_89] : memref<8x32xf32, #tpu.memory_space<vmem>>, vector<8x32xf32>
      %c0_90 = arith.constant 0 : index
      %c0_91 = arith.constant 0 : index
      %c0_92 = arith.constant 0 : index
      %205 = vector.load %arg15[%c0_90, %c0_91, %c0_92] : memref<1x8x32xf32, #tpu.memory_space<vmem>>, vector<1x8x32xf32>
      %206 = vector.shape_cast %205 : vector<1x8x32xf32> to vector<8x32xf32>
      %207 = vector.shape_cast %204 : vector<8x32xf32> to vector<1x8x32xf32>
      tpu.vector_store %arg15[%c0_90, %c0_91, %c0_92], %207 {strides = array<i32>} : memref<1x8x32xf32, #tpu.memory_space<vmem>>, vector<1x8x32xf32>,
    } else {
    }
    return
  }
  func.func @transform_0(%arg0: i32, %arg1: i32) -> (i32, i32, i32) {
    %c0_i32 = arith.constant 0 : i32
    %c0_i32_0 = arith.constant 0 : i32
    %c0_i32_1 = arith.constant 0 : i32
    return %arg0, %c0_i32, %c0_i32_0 : i32, i32, i32
  }
  func.func @transform_1(%arg0: i32, %arg1: i32) -> (i32, i32, i32) {
    %c0_i32 = arith.constant 0 : i32
    %c0_i32_0 = arith.constant 0 : i32
    %c0_i32_1 = arith.constant 0 : i32
    return %arg1, %c0_i32, %c0_i32_0 : i32, i32, i32
  }
  func.func @transform_2(%arg0: i32, %arg1: i32) -> (i32, i32, i32) {
    %c0_i32 = arith.constant 0 : i32
    %c0_i32_0 = arith.constant 0 : i32
    %c0_i32_1 = arith.constant 0 : i32
    return %arg1, %c0_i32, %c0_i32_0 : i32, i32, i32
  }
  func.func @transform_3(%arg0: i32, %arg1: i32) -> (i32, i32, i32, i32) {
    %c0_i32 = arith.constant 0 : i32
    %c0_i32_0 = arith.constant 0 : i32
    %c0_i32_1 = arith.constant 0 : i32
    %c0_i32_2 = arith.constant 0 : i32
    return %arg1, %c0_i32, %c0_i32_0, %c0_i32_1 : i32, i32, i32, i32
  }
  func.func @transform_4(%arg0: i32, %arg1: i32) -> (i32, i32, i32) {
    %c0_i32 = arith.constant 0 : i32
    %c0_i32_0 = arith.constant 0 : i32
    %c0_i32_1 = arith.constant 0 : i32
    return %arg1, %c0_i32, %c0_i32_0 : i32, i32, i32
  }
  func.func @transform_5(%arg0: i32, %arg1: i32) -> (i32, i32, i32) {
    %c0_i32 = arith.constant 0 : i32
    %c0_i32_0 = arith.constant 0 : i32
    %c0_i32_1 = arith.constant 0 : i32
    return %arg1, %c0_i32, %c0_i32_0 : i32, i32, i32
  }
  func.func @transform_6(%arg0: i32, %arg1: i32) -> (i32, i32, i32) {
    %c0_i32 = arith.constant 0 : i32
    %c0_i32_0 = arith.constant 0 : i32
    %c0_i32_1 = arith.constant 0 : i32
    return %arg1, %c0_i32, %c0_i32_0 : i32, i32, i32
  }
  func.func @transform_7(%arg0: i32, %arg1: i32) -> (i32, i32, i32) {
    %c0_i32 = arith.constant 0 : i32
    %c0_i32_0 = arith.constant 0 : i32
    %c0_i32_1 = arith.constant 0 : i32
    return %arg1, %c0_i32, %c0_i32_0 : i32, i32, i32
  }
  func.func @transform_8(%arg0: i32, %arg1: i32) -> (i32, i32, i32) {
    %c0_i32 = arith.constant 0 : i32
    %c0_i32_0 = arith.constant 0 : i32
    %c0_i32_1 = arith.constant 0 : i32
    return %arg1, %c0_i32, %c0_i32_0 : i32, i32, i32
  }
  func.func @transform_9(%arg0: i32, %arg1: i32) -> (i32, i32, i32) {
    %c0_i32 = arith.constant 0 : i32
    %c0_i32_0 = arith.constant 0 : i32
    %c0_i32_1 = arith.constant 0 : i32
    return %arg1, %c0_i32, %c0_i32_0 : i32, i32, i32
  }
  func.func @transform_10(%arg0: i32, %arg1: i32) -> (i32, i32, i32) {
    %c0_i32 = arith.constant 0 : i32
    %c0_i32_0 = arith.constant 0 : i32
    %c0_i32_1 = arith.constant 0 : i32
    return %arg1, %c0_i32, %c0_i32_0 : i32, i32, i32
  }
  func.func @transform_11(%arg0: i32, %arg1: i32) -> (i32, i32, i32) {
    %c0_i32 = arith.constant 0 : i32
    %c0_i32_0 = arith.constant 0 : i32
    %c0_i32_1 = arith.constant 0 : i32
    return %arg1, %c0_i32, %c0_i32_0 : i32, i32, i32
  }
  func.func @transform_12(%arg0: i32, %arg1: i32) -> (i32, i32, i32) {
    %c0_i32 = arith.constant 0 : i32
    %c0_i32_0 = arith.constant 0 : i32
    %c0_i32_1 = arith.constant 0 : i32
    return %arg1, %c0_i32, %c0_i32_0 : i32, i32, i32
  }
  func.func @transform_13(%arg0: i32, %arg1: i32) -> (i32, i32, i32) {
    %c0_i32 = arith.constant 0 : i32
    %c0_i32_0 = arith.constant 0 : i32
    %c0_i32_1 = arith.constant 0 : i32
    return %arg0, %c0_i32, %c0_i32_0 : i32, i32, i32
  }
}

</mosaic_0001>

<bundles_post_ra>
// kernel: transformer_forward.3
= control target key start
LH: loop header
LB: loop body
LE: loop exit
PB: predicated region body
PF: predicated region fallthrough
CT: control target
= control target key end

     0   :  { %s340_s15 = smov 0   ;;  %s366_s0 = inlined_call_operand.vmem [shape: f32[2,8,16], index: 0, kind: input, shape index: {}]   ;;  %s367_s1 = inlined_call_operand.vmem [shape: f32[8,32], index: 1, kind: input, shape index: {}]   ;;  %s368_s2 = inlined_call_operand.vmem [shape: bf16[16,32], index: 2, kind: input, shape index: {}]   ;;  %s369_s3 = inlined_call_operand.vmem [shape: f32[1,32], index: 3, kind: input, shape index: {}]   ;;  %s370_s4 = inlined_call_operand.vmem [shape: f32[2,8,32], index: 4, kind: output, shape index: {}]  }
   0x1 LB: > { %s283_s16 = sadd.s32 4294967295, %s313_s15   ;;  %p287_p0 = scmp.ge.s32.totalorder %s313_s15, 1  ;;  %s313_s15 = sphi %s340_s15, %s14_s15  }
   0x2   : > { %p161_p1 = scmp.lt.s32.totalorder %s313_s15, 3 }
   0x4   : > { %p162_p2 = pnand %p287_p0, %p161_p1 }
   0x5   : > { %p185_p3 = scmp.lt.s32.totalorder (!%p162_p2), %s283_s16, 1 }
   0x6   : > { %165 = sbr.rel (%p162_p2) target bundleno = 151 (0x97), region = 36 }
   0xb   : > { %v297_v0 = vld [vmem:[%s368_s2] sm:$0xff]  ;;  %s372_s16 = smov (!%p185_p3, %s283_s16), 1  ;;  %vm208_vm0 = vcmask 130048   ;;  %vm228_vm1 = vcmask 261120  }
   0xc   : > { %219 = vmatpush.bf16.msra.mxu0 %v297_v0  ;;  %s288_s19 = sshll.u32 %s372_s16, 3  ;;  %v306_v3 = vld [vmem:[%s369_s3] ss:$0 sm:$0xff] }
   0xd   : > { %s188_s22 = scalar_lea.vmem %s366_s0, %s288_s19  ;;  %v226_v6 = vld [vmem:[%s367_s1] sm:$0xff]  ;;  %s192_s29 = scalar_lea.vmem %s370_s4, %s288_s19 }
   0xe   : > { %v194_v1 = vld [vmem:[%s188_s22] sm:$0xff] }
   0xf   : > { %v195_v2 = vpack.c.bf16 %v194_v1, %v194_v1 }
  0x11   : > { %294 = vmatmul.msk.bf16.vlgmr.msra.gmra.mxu0 %vm208_vm0, %v195_v2 }
  0x8e   : > { %v221_v4 = vpop.f32.mrf.mxu0 }
  0x8f   : > { %v222_v5 = vadd.f32 %v306_v3, %v221_v4 }
  0x91   : > { %v225_v7 = vmul.f32 5.656854, %v222_v5 }
  0x93   : > { %v227_v8 = vadd.f32 %v226_v6, %v225_v7 }
  0x95   : > { %229 = vst.msk [vmem:[%s192_s29] sm:$0xff] %vm228_vm1, %v227_v8 }
  0x96   : > { %v223_v9 = vpop.f32.mrf.mxu0 }
  0x97 PF: > { %s14_s15 = sadd.s32 1, %s313_s15  }
  0x98   : > { %p11_p4 = scmp.ge.s32.totalorder %s14_s15, 4  }
  0x9a   :  { %13 = sbr.rel (!%p11_p4) target bundleno = 1 (0x1), region = 66 }

// kernel: transformer_forward.5
= control target key start
LH: loop header
LB: loop body
LE: loop exit
PB: predicated region body
PF: predicated region fallthrough
CT: control target
= control target key end

     0   :  { %vm38_vm0 = vcmask 261120   ;;  %s115_s1 = inlined_call_operand.vmem [shape: bf16[32,128], index: 1, kind: input, shape index: {}]   ;;  %s116_s0 = inlined_call_operand.vmem [shape: f32[16,32], index: 0, kind: input, shape index: {}]   ;;  %s117_s2 = inlined_call_operand.vmem [shape: f32[1,128], index: 2, kind: input, shape index: {}]   ;;  %s118_s3 = inlined_call_operand.vmem [shape: f32[16,128], index: 3, kind: output, shape index: {}]  }
   0x1   :  { %v72_v0 = vld [vmem:[%s115_s1 + $0x8] sm:$0xff]  ;;  %v71_v1 = vld [vmem:[%s115_s1] sm:$0xff] }
   0x2   :  { %48 = vmatpush.bf16.msra.mxu0 %v72_v0  ;;  %v15_v2 = vld [vmem:[%s116_s0] sm:$0xff]  ;;  %v16_v3 = vld [vmem:[%s116_s0 + $0x8] sm:$0xff] }
   0x3   :  { %v17_v4 = vpack.c.bf16 %v16_v3, %v15_v2  ;;  %v73_v5 = vld [vmem:[%s117_s2] ss:$0 sm:$0xff] }
   0x6   :  { %49 = vmatpush.bf16.msra.mxu0 %v71_v1 }
   0x9   :  { %70 = vmatmul.msk.bf16.vlgmr.msra.gmra.mxu0 %vm38_vm0, %v17_v4 }
  0x86   :  { %v51_v6 = vpop.f32.mrf.mxu0 }
  0x87   :  { %v52_v7 = vadd.f32 %v73_v5, %v51_v6 }
  0x89   :  { %56 = vst [vmem:[%s118_s3] sm:$0xff] %v52_v7 }
  0x8e   :  { %v53_v8 = vpop.f32.mrf.mxu0 }
  0x8f   :  { %v54_v9 = vadd.f32 %v73_v5, %v53_v8 }
  0x91   :  { %57 = vst [vmem:[%s118_s3 + $0x8] sm:$0xff] %v54_v9 }

// kernel: transformer_forward.4
= control target key start
LH: loop header
LB: loop body
LE: loop exit
PB: predicated region body
PF: predicated region fallthrough
CT: control target
= control target key end

     0   :  { %s1658_s25 = smov 0   ;;  %s1660_s26 = smov 0   ;;  %s1882_s0 = inlined_call_operand.vmem [shape: f32[2,8,32], index: 0, kind: input, shape index: {}]   ;;  %s1883_s1 = inlined_call_operand.vmem [shape: bf16[2,32,96], index: 1, kind: input, shape index: {}]   ;;  %s1884_s2 = inlined_call_operand.vmem [shape: f32[2,1,96], index: 2, kind: input, shape index: {}]   ;;  %s1885_s3 = inlined_call_operand.vmem [shape: bf16[2,4,8,32], index: 3, kind: input, shape index: {}]   ;;  %s1886_s4 = inlined_call_operand.vmem [shape: f32[2,1,32], index: 4, kind: input, shape index: {}]   ;;  %s1887_s5 = inlined_call_operand.vmem [shape: f32[2,1,32], index: 5, kind: input, shape index: {}]   ;;  %s1888_s6 = inlined_call_operand.vmem [shape: f32[2,1,32], index: 6, kind: input, shape index: {}]   ;;  %s1889_s7 = inlined_call_operand.vmem [shape: bf16[2,32,64], index: 7, kind: input, shape index: {}]   ;;  %s1890_s8 = inlined_call_operand.vmem [shape: f32[2,1,64], index: 8, kind: input, shape index: {}]   ;;  %s1891_s9 = inlined_call_operand.vmem [shape: bf16[2,64,32], index: 9, kind: input, shape index: {}]   ;;  %s1892_s10 = inlined_call_operand.vmem [shape: f32[2,1,32], index: 10, kind: input, shape index: {}]   ;;  %s1893_s11 = inlined_call_operand.vmem [shape: f32[2,1,32], index: 11, kind: input, shape index: {}]   ;;  %s1894_s12 = inlined_call_operand.vmem [shape: f32[2,1,32], index: 12, kind: input, shape index: {}]   ;;  %s1895_s13 = inlined_call_operand.vmem [shape: f32[2,8,32], index: 13, kind: output, shape index: {}]  }
   0x1   :  { %1900 = sst [smem:[#allocation9_spill]] %s1882_s0  ;;  %s1662_s27 = smov 0  }
   0x2   :  { %1901 = sst [smem:[#allocation10_spill]] %s1883_s1  ;;  %s1664_s28 = smov 0  }
   0x3   :  { %1902 = sst [smem:[#allocation11_spill]] %s1884_s2  ;;  %s1666_s29 = smov 0  }
   0x4   :  { %1903 = sst [smem:[#allocation12_spill]] %s1885_s3 }
   0x5   :  { %1904 = sst [smem:[#allocation13_spill]] %s1889_s7 }
   0x6   :  { %1905 = sst [smem:[#allocation14_spill]] %s1890_s8 }
   0x7   :  { %1906 = sst [smem:[#allocation15_spill]] %s1894_s12 }
   0x8   :  { %1907 = sst [smem:[#allocation16_spill]] %s1895_s13 }
   0x9 LB: > { %1908 = sst [smem:[#allocation3_spill]] %s1557_s25  ;;  %s32_s30 = sadd.s32 1, %s1565_s27  ;;  %s1573_s29 = sphi %s1666_s29, %s23_s29   ;;  %s1569_s28 = sphi %s1664_s28, %s1934_s28   ;;  %s1565_s27 = sphi %s1662_s27, %s1933_s27   ;;  %s1561_s26 = sphi %s1660_s26, %s1932_s26   ;;  %s1557_s25 = sphi %s1658_s25, %s1931_s25  }
   0xa   : > { %1909 = sst [smem:[#allocation4_spill]] %s1565_s27  ;;  %s35_s14 = sadd.s32 1, %s1569_s28 }
   0xb   : > { %1910 = sst [smem:[#allocation5_spill]] %s1569_s28  ;;  %p33_p0 = scmp.ge.s32.totalorder %s32_s30, 2 }
   0xc   : > { %1911 = sst [smem:[#allocation6_spill]] %s1573_s29  ;;  %p1375_p1 = scmp.ge.s32.totalorder %s1573_s29, 1 }
   0xd   : > { %p502_p2 = scmp.lt.s32.totalorder %s1573_s29, 5  ;;  %s1936_s30 = smov (%p33_p0, %s32_s30), 0 }
   0xe   : > { %1912 = sst [smem:[#allocation7_spill]] %s1936_s30  ;;  %s1938_s14 = smov (!%p33_p0, %s35_s14), %s1569_s28 }
   0xf   : > { %p503_p3 = pnand %p1375_p1, %p502_p2  ;;  %p37_p4 = scmp.ge.s32.totalorder %s1938_s14, 2 }
  0x10   : > { %p588_p5 = scmp.lt.s32.totalorder (!%p503_p3), %s1561_s26, 1  ;;  %p592_p6 = scmp.lt.s32.totalorder (!%p503_p3), %s1557_s25, 1 }
  0x11   : > { %s1940_s14 = smov (%p37_p4, %s1938_s14), 0  ;;  %506 = sbr.rel (%p503_p3) target bundleno = 2740 (0xab4), region = 72 }
  0x12   : > { %1913 = sst [smem:[#allocation8_spill]] %s1940_s14 }
  0x13   : > { %s1914_s0 = sld [smem:[#allocation9_spill]] (!%p503_p3) }
  0x14   : > { %s1915_s1 = sld [smem:[#allocation10_spill]] (!%p503_p3) }
  0x15   : > { %s1916_s2 = sld [smem:[#allocation11_spill]] (!%p503_p3) }
  0x16   : > { %s1942_s26 = smov (!%p588_p5, %s1561_s26), 1  ;;  %s1917_s3 = sld [smem:[#allocation12_spill]] }
  0x17   : > { %s1692_s15 = scalar_select %p592_p6, %s1557_s25, 1 }
  0x18   : > { %s1376_s16 = sshll.u32 %s1942_s26, 3  ;;  %s1918_s7 = sld [smem:[#allocation13_spill]] }
  0x19   : > { %s591_s19 = scalar_lea.vmem %s1914_s0, %s1376_s16  ;;  %s1440_s20 = sshll.u32 %s1692_s15, 4 }
  0x1a   : > { %s596_s23 = scalar_lea.vmem %s1915_s1, %s1440_s20  ;;  %s629_s13 = scalar_lea.vmem %s1892_s10, %s1692_s15 }
  0x1b   : > { %s599_s30 = scalar_lea.vmem %s1916_s2, %s1692_s15  ;;  %s632_s1 = scalar_lea.vmem %s1893_s11, %s1692_s15 }
  0x1c   : > { %s1708_s29 = scalar_lea.vmem %s1917_s3, %s1440_s20  ;;  %s1443_s3 = sshll.u32 %s1692_s15, 5 }
  0x1d   : > { %s1739_s0 = scalar_lea.vmem %s1891_s9, %s1443_s3  ;;  %s1920_s22 = sld [smem:[#allocation15_spill]] }
  0x1e   : > { %s1725_s24 = scalar_lea.vmem %s1918_s7, %s1440_s20  ;;  %s1921_s2 = sld [smem:[#allocation16_spill]] }
  0x1f   : > { %s1922_s25 = sld [smem:[#allocation3_spill]] }
  0x23   : > { %s635_s7 = scalar_lea.vmem %s1920_s22, %s1692_s15 }
  0x24   : > { %s1752_s8 = scalar_lea.vmem %s1921_s2, %s1376_s16 }
  0x25   : > { %p1386_p7 = scmp.ne.s32.totalorder %s1922_s25, 0 }
  0x27   : > { %644 = sbr.rel (%p1386_p7) target bundleno = 46 (0x2e), region = 76 }
  0x2c   : > { %v645_v0 = vld [vmem:[%s591_s19] sm:$0xff]  ;;  %vm646_vm0 = vcmask 261120  }
  0x2d   : > { %647 = vst.msk [vmem:[#allocation2] sm:$0xff] %vm646_vm0, %v645_v0 }
  0x2e PF: > { %v1445_v1 = vld [vmem:[%s596_s23 + $0x8] sm:$0xff]  ;;  %v1444_v2 = vld [vmem:[%s596_s23] sm:$0xff]  ;;  %vm670_vm1 = vcmask 261120   ;;  %s1575_s2 = smov 88   ;;  %s1576_s3 = smov 96   ;;  %vm702_vm2 = vcmask 64512   ;;  %v687_v12 = vlaneseq }
  0x2f   : > { %680 = vmatpush.bf16.msra.mxu0 %v1445_v1  ;;  %v1505_v5 = vld [vmem:[%s599_s30] ss:$0 sm:$0xff]  ;;  %s1577_s16 = smov 120   ;;  %v1578_v15 = vmov -1e+30   ;;  %s1579_s30 = smov 56  }
  0x30   : > { %v688_v13 = vshrl.u32 %v687_v12, 7  ;;  %v690_v14 = vand.u32 127, %v687_v12  ;;  %s1580_s19 = smov 112   ;;  %s1581_s23 = smov 104   ;;  %vm739_vm4 = vcmask 1043456   ;;  %vm1130_vm9 = vcmask 523264  }
  0x31   : > { %v757_v21 = vld [vmem:[%s1708_s29] sm:$0xf]  ;;  %s1582_s22 = smov 64   ;;  %s1583_s26 = smov 80   ;;  %v1401_v56 = vld [vmem:[%s1708_s29 + $0x4] sm:$0xf] }
  0x32   : > { %vm691_vm3 = vcmp.le.s32.totalorder %v690_v14, %v688_v13  ;;  %v762_v22 = vsel %vm739_vm4, %v757_v21, 0  ;;  %s1584_s17 = smov 72   ;;  %v841_v57 = vsel %vm739_vm4, %v1401_v56, 0  ;;  %s1585_s18 = smov 48  }
  0x33   : > { %681 = vmatpush.bf16.msra.mxu0 %v1444_v2  ;;  %v1768_v16 = vsel %vm691_vm3, 0.0, %v1578_v15  ;;  %771 = vmatpush.bf16.msra.mxu3 %v762_v22  ;;  %s1923_s20 = scalar_lea.vmem %s1886_s4, %s1692_s15  ;;  %s1586_s14 = smov 40  }
  0x34   : > { %v1755_v3 = vld [vmem:[#allocation2] sm:$0xff]  ;;  %s1924_s27 = scalar_lea.vmem %s1887_s5, %s1692_s15  ;;  %s1929_s12 = sld [smem:[#allocation3_spill]] }
  0x35   : > { %v649_v4 = vpack.c.bf16 %v1755_v3, %v1755_v3 }
  0x37   : > { %1395 = vmatmul.msk.bf16.vlgmr.msra.gmra.mxu0 %vm670_vm1, %v649_v4 }
  0x38   : > { %850 = vmatpush.bf16.msrb.mxu0 %v841_v57 }
  0x3a   : > { %p1437_p8 = scmp.ne.s32.totalorder %s1929_s12, 1 }
  0xb4   : > { %v683_v6 = vpop.f32.mrf.mxu0 }
  0xb5   : > { %v684_v7 = vadd.f32 %v1505_v5, %v683_v6 }
  0xb7   : > { %v1760_v8 = vpack.c.bf16 %v684_v7, %v684_v7 }
  0xb9   : > { %780 = vrot.lane.b32.xlu2 %v1760_v8, %s1575_s2  ;;  %700 = vrot.lane.b32.xlu0 %v1760_v8, %s1576_s3  ;;  %s1925_s2 = scalar_lea.vmem %s1888_s6, %s1692_s15 }
  0xbc   : > { %v685_v9 = vpop.f32.mrf.mxu0 }
  0xc1   : > { %778 = vrot.lane.b32.xlu2 %v1760_v8, %s1577_s16 }
 0x113   : > { %v781_v32 = vpop.permute.xlu2 %780 }
 0x114   : > { %v786_v36 = vsel %vm702_vm2, %v781_v32, 0 }
 0x11b   : > { %v779_v38 = vpop.permute.xlu2 %778 }
 0x12b   : > { %v701_v10 = vpop.permute.xlu0 %700 }
 0x12c   : > { %v707_v11 = vsel %vm702_vm2, %v701_v10, 0 }
 0x12d   : > { %716 = vmatpush.bf16.xpose.msra.mxu1 %v707_v11 }
 0x134   : > { %1396 = vmatmul.msk.bf16.vlgmr.msra.gmra.mxu1 %vm702_vm2, %v1760_v8 }
 0x1b1   : > { %v718_v17 = vpop.f32.mrf.mxu1 }
 0x1b2   : > { %v719_v18 = vadd.f32 %v718_v17, %v1768_v16 }
 0x1b4   : > { %v722_v19 = vsel %vm702_vm2, %v719_v18, -inf }
 0x1b5   : > { %723 = vmax.xlane.f32.xlu0 %v722_v19  ;;  %v1506_v19 = vld [vmem:[%s1923_s20] ss:$0 sm:$0xff] }
 0x1b9   : > { %v720_v20 = vpop.f32.mrf.mxu1 }
 0x1c9   : > { %813 = vrot.lane.b32.xlu0 %v1760_v8, %s1579_s30  ;;  %s1926_s30 = sld [smem:[#allocation14_spill]] }
 0x1d1   : > { %857 = vrot.lane.b32.xlu0 %v1760_v8, %s1580_s19  ;;  %s1927_s19 = scalar_lea.vmem %s1926_s30, %s1692_s15 }
 0x1d9   : > { %936 = vrot.lane.b32.xlu0 %v1760_v8, %s1581_s23 }
 0x228   : > { %v724_v23 = vpop.xlane.xlu0 %723 }
 0x229   : > { %v725_v24 = vsub.f32 %v719_v18, %v724_v23 }
 0x22b   : > { %v726_v25 = vmul.f32 1.442695, %v725_v24 }
 0x22d   : > { %1513 = vpow2.f32 %v726_v25 }
 0x233   : > { %v1514_v26 = vpop.eup %1513 }
 0x234   : > { %v728_v27 = vsel %vm702_vm2, %v1514_v26, 0.0 }
 0x235   : > { %729 = vadd.xlane.f32.xlu1 %v728_v27 }
 0x23b   : > { %v814_v28 = vpop.permute.xlu0 %813 }
 0x23c   : > { %v819_v29 = vsel %vm739_vm4, %v814_v28, 0 }
 0x23d   : > { %828 = vmatpush.bf16.msrb.mxu3 %v819_v29 }
 0x243   : > { %v858_v55 = vpop.permute.xlu0 %857 }
 0x24b   : > { %v937_v17 = vpop.permute.xlu0 %936 }
 0x24e   : > { %734 = vrot.lane.b32.xlu1 %v1760_v8, %s1582_s22 }
 0x2a8   : > { %v730_v30 = vpop.xlane.xlu1 %729 }
 0x2a9   : > { %1515 = vrcp.f32 %v730_v30 }
 0x2af   : > { %v1516_v31 = vpop.eup %1515 }
 0x2b0   : > { %v732_v33 = vmul.f32 %v1516_v31, %v1514_v26  ;;  %v1405_v31 = vld [vmem:[%s1708_s29 + $0x8] sm:$0xf] }
 0x2b1   : > { %v920_v32 = vsel %vm739_vm4, %v1405_v31, 0 }
 0x2b2   : > { %v733_v37 = vpack.c.bf16 %v732_v33, %v732_v33 }
 0x2c0   : > { %v735_v34 = vpop.permute.xlu1 %734 }
 0x2c1   : > { %v741_v35 = vsel %vm739_vm4, %v735_v34, 0 }
 0x2c2   : > { %750 = vmatpush.bf16.msra.mxu2 %v741_v35 }
 0x2c5   : > { %1397 = vmatmul.msk.bf16.vlgmr.msra.gmra.mxu2 %vm702_vm2, %v733_v37 }
 0x2c6   : > { %795 = vmatpush.bf16.xpose.msrb.mxu2 %v786_v36 }
 0x2d5   : > { %1399 = vmatmul.msk.bf16.vlgmr.msrb.gmra.mxu2 %vm702_vm2, %v779_v38 }
 0x348   : > { %v752_v39 = vpop.f32.mrf.mxu2 }
 0x349   : > { %v756_v40 = vpack.c.bf16 %v752_v39, %v752_v39 }
 0x34b   : > { %1398 = vmatmul.msk.bf16.vlgmr.msra.gmra.mxu3 %vm702_vm2, %v756_v40 }
 0x34c   : > { %929 = vmatpush.bf16.msra.mxu3 %v920_v32 }
 0x350   : > { %v754_v41 = vpop.f32.mrf.mxu2 }
 0x358   : > { %v797_v42 = vpop.f32.mrf.mxu2 }
 0x359   : > { %v798_v43 = vadd.f32 %v797_v42, %v1768_v16 }
 0x35b   : > { %v801_v44 = vsel %vm702_vm2, %v798_v43, -inf }
 0x35c   : > { %802 = vmax.xlane.f32.xlu2 %v801_v44 }
 0x360   : > { %v799_v45 = vpop.f32.mrf.mxu2 }
 0x374   : > { %859 = vrot.lane.b32.xlu2 %v1760_v8, %s1583_s26 }
 0x3ce   : > { %v773_v46 = vpop.f32.mrf.mxu3 }
 0x3cf   : > { %v803_v47 = vpop.xlane.xlu2 %802  ;;  %v777_v22 = vadd.f32 %v1506_v19, %v773_v46 }
 0x3d0   : > { %v804_v48 = vsub.f32 %v798_v43, %v803_v47 }
 0x3d2   : > { %v805_v49 = vmul.f32 1.442695, %v804_v48 }
 0x3d4   : > { %1517 = vpow2.f32 %v805_v49  ;;  %v1409_v49 = vld [vmem:[%s1708_s29 + $0xc] sm:$0xf] }
 0x3d6   : > { %v775_v50 = vpop.f32.mrf.mxu3 }
 0x3d7   : > { %v860_v51 = vpop.permute.xlu2 %859  ;;  %v999_v50 = vsel %vm739_vm4, %v1409_v49, 0 }
 0x3d8   : > { %v865_v52 = vsel %vm702_vm2, %v860_v51, 0 }
 0x3d9   : > { %874 = vmatpush.bf16.xpose.msrb.mxu1 %v865_v52 }
 0x3da   : > { %v1518_v53 = vpop.eup %1517 }
 0x3db   : > { %v807_v54 = vsel %vm702_vm2, %v1518_v53, 0.0 }
 0x3dc   : > { %808 = vadd.xlane.f32.xlu1 %v807_v54 }
 0x3e0   : > { %1403 = vmatmul.msk.bf16.vlgmr.msrb.gmra.mxu1 %vm702_vm2, %v858_v55 }
 0x3f5   : > { %938 = vrot.lane.b32.xlu1 %v1760_v8, %s1584_s17 }
 0x44f   : > { %v809_v58 = vpop.xlane.xlu1 %808 }
 0x450   : > { %1519 = vrcp.f32 %v809_v58  ;;  %v1587_v58 = vmov 32.0  }
 0x456   : > { %v1520_v59 = vpop.eup %1519 }
 0x457   : > { %v811_v60 = vmul.f32 %v1520_v59, %v1518_v53 }
 0x459   : > { %v812_v61 = vpack.c.bf16 %v811_v60, %v811_v60 }
 0x45b   : > { %1400 = vmatmul.msk.bf16.vlgmr.msrb.gmra.mxu3 %vm702_vm2, %v812_v61 }
 0x45d   : > { %v876_v62 = vpop.f32.mrf.mxu1 }
 0x45e   : > { %v877_v63 = vadd.f32 %v876_v62, %v1768_v16 }
 0x460   : > { %v880_v0 = vsel %vm702_vm2, %v877_v63, -inf }
 0x461   : > { %881 = vmax.xlane.f32.xlu2 %v880_v0 }
 0x465   : > { %v878_v1 = vpop.f32.mrf.mxu1 }
 0x467   : > { %v939_v2 = vpop.permute.xlu1 %938 }
 0x468   : > { %v944_v4 = vsel %vm702_vm2, %v939_v2, 0 }
 0x469   : > { %953 = vmatpush.bf16.xpose.msra.mxu0 %v944_v4 }
 0x479   : > { %892 = vrot.lane.b32.xlu2 %v1760_v8, %s1585_s18 }
 0x4d4   : > { %v882_v5 = vpop.xlane.xlu2 %881 }
 0x4d5   : > { %v883_v6 = vsub.f32 %v877_v63, %v882_v5 }
 0x4d7   : > { %v884_v7 = vmul.f32 1.442695, %v883_v6  ;;  %v1447_v6 = vld [vmem:[%s1725_s24 + $0x8] sm:$0xff] }
 0x4d8   : > { %1085 = vmatpush.bf16.msrb.mxu3 %v1447_v6 }
 0x4d9   : > { %1521 = vpow2.f32 %v884_v7  ;;  %v1446_v7 = vld [vmem:[%s1725_s24] sm:$0xff] }
 0x4dc   : > { %v893_v9 = vpop.permute.xlu2 %892  ;;  %1086 = vmatpush.bf16.msrb.mxu3 %v1446_v7 }
 0x4dd   : > { %v898_v10 = vsel %vm739_vm4, %v893_v9, 0  ;;  %v1451_v9 = vld [vmem:[%s1739_s0 + $0x18] sm:$0xff] }
 0x4de   : > { %v830_v11 = vpop.f32.mrf.mxu3  ;;  %907 = vmatpush.bf16.msra.mxu2 %v898_v10 }
 0x4df   : > { %v1522_v12 = vpop.eup %1521  ;;  %v834_v13 = vpack.c.bf16 %v830_v11, %v830_v11 }
 0x4e0   : > { %v886_v14 = vsel %vm702_vm2, %v1522_v12, 0.0 }
 0x4e1   : > { %1402 = vmatmul.msk.bf16.vlgmr.msrb.gmra.mxu0 %vm702_vm2, %v834_v13  ;;  %887 = vadd.xlane.f32.xlu1 %v886_v14 }
 0x4e2   : > { %1008 = vmatpush.bf16.msrb.mxu2 %v999_v50  ;;  %1138 = vmatpush.bf16.msrb.mxu0 %v1451_v9 }
 0x4e6   : > { %v832_v15 = vpop.f32.mrf.mxu3 }
 0x4f1   : > { %1407 = vmatmul.msk.bf16.vlgmr.msra.gmra.mxu0 %vm702_vm2, %v937_v17 }
 0x554   : > { %v888_v18 = vpop.xlane.xlu1 %887 }
 0x555   : > { %1523 = vrcp.f32 %v888_v18 }
 0x55b   : > { %v1524_v20 = vpop.eup %1523 }
 0x55c   : > { %v890_v21 = vmul.f32 %v1524_v20, %v1522_v12  ;;  %v1450_v12 = vld [vmem:[%s1739_s0 + $0x10] sm:$0xff] }
 0x55d   : > { %1139 = vmatpush.bf16.msrb.mxu0 %v1450_v12 }
 0x55e   : > { %v891_v23 = vpack.c.bf16 %v890_v21, %v890_v21  ;;  %v852_v24 = vpop.f32.mrf.mxu0  ;;  %v1507_v21 = vld [vmem:[%s1924_s27] ss:$0 sm:$0xff] }
 0x55f   : > { %v856_v25 = vadd.f32 %v852_v24, %v777_v22 }
 0x560   : > { %1404 = vmatmul.msk.bf16.vlgmr.msra.gmra.mxu2 %vm702_vm2, %v891_v23  ;;  %v1508_v23 = vld [vmem:[%s1925_s2] ss:$0 sm:$0xff] }
 0x566   : > { %v854_v26 = vpop.f32.mrf.mxu0 }
 0x56e   : > { %v955_v27 = vpop.f32.mrf.mxu0 }
 0x56f   : > { %v956_v28 = vadd.f32 %v955_v27, %v1768_v16 }
 0x571   : > { %v959_v29 = vsel %vm702_vm2, %v956_v28, -inf }
 0x572   : > { %960 = vmax.xlane.f32.xlu0 %v959_v29  ;;  %v1448_v29 = vld [vmem:[%s1739_s0] sm:$0xff] }
 0x576   : > { %v957_v30 = vpop.f32.mrf.mxu0 }
 0x577   : > { %v1509_v30 = vld [vmem:[%s1927_s19] ss:$0 sm:$0xff] }
 0x5e3   : > { %v909_v33 = vpop.f32.mrf.mxu2 }
 0x5e4   : > { %v913_v34 = vpack.c.bf16 %v909_v33, %v909_v33 }
 0x5e5   : > { %v961_v35 = vpop.xlane.xlu0 %960 }
 0x5e6   : > { %v962_v36 = vsub.f32 %v956_v28, %v961_v35  ;;  %1406 = vmatmul.msk.bf16.vlgmr.msra.gmra.mxu3 %vm702_vm2, %v913_v34  ;;  %v1449_v28 = vld [vmem:[%s1739_s0 + $0x8] sm:$0xff] }
 0x5e7   : > { %1140 = vmatpush.bf16.msrb.mxu0 %v1449_v28 }
 0x5e8   : > { %v963_v37 = vmul.f32 1.442695, %v962_v36  ;;  %v1510_v36 = vld [vmem:[%s629_s13] ss:$0 sm:$0xff] }
 0x5ea   : > { %1525 = vpow2.f32 %v963_v37 }
 0x5eb   : > { %v911_v38 = vpop.f32.mrf.mxu2  ;;  %1141 = vmatpush.bf16.msrb.mxu0 %v1448_v29 }
 0x5f0   : > { %v1526_v39 = vpop.eup %1525 }
 0x5f1   : > { %v965_v16 = vsel %vm702_vm2, %v1526_v39, 0.0 }
 0x5f2   : > { %966 = vadd.xlane.f32.xlu0 %v965_v16 }
 0x606   : > { %971 = vrot.lane.b32.xlu0 %v1760_v8, %s1586_s14 }
 0x665   : > { %v967_v42 = vpop.xlane.xlu0 %966 }
 0x666   : > { %1527 = vrcp.f32 %v967_v42 }
 0x667   : > { %1529 = vrcp.f32 %v1587_v58 }
 0x669   : > { %v931_v40 = vpop.f32.mrf.mxu3 }
 0x66a   : > { %v935_v41 = vadd.f32 %v931_v40, %v856_v25 }
 0x66c   : > { %v1528_v44 = vpop.eup %1527 }
 0x66d   : > { %v969_v45 = vmul.f32 %v1528_v44, %v1526_v39  ;;  %v1530_v59 = vpop.eup %1529 }
 0x66e   : > { %v1022_v60 = vmul.f32 32.0, %v1530_v59  ;;  %vm1026_vm5 = vweird.f32 %v1530_v59 }
 0x66f   : > { %v970_v48 = vpack.c.bf16 %v969_v45, %v969_v45 }
 0x670   : > { %v1023_v61 = vsub.f32 1.0, %v1022_v60 }
 0x671   : > { %v933_v43 = vpop.f32.mrf.mxu3 }
 0x672   : > { %v1024_v62 = vmul.f32 %v1530_v59, %v1023_v61 }
 0x674   : > { %v1025_v63 = vadd.f32 %v1530_v59, %v1024_v62 }
 0x676   : > { %v1027_v0 = vsel %vm1026_vm5, %v1530_v59, %v1025_v63 }
 0x678   : > { %v972_v46 = vpop.permute.xlu0 %971 }
 0x679   : > { %v977_v47 = vsel %vm739_vm4, %v972_v46, 0 }
 0x67a   : > { %986 = vmatpush.bf16.msra.mxu1 %v977_v47 }
 0x67d   : > { %1408 = vmatmul.msk.bf16.vlgmr.msra.gmra.mxu1 %vm702_vm2, %v970_v48 }
 0x6fa   : > { %v988_v51 = vpop.f32.mrf.mxu1 }
 0x6fb   : > { %v992_v8 = vpack.c.bf16 %v988_v51, %v988_v51 }
 0x6fd   : > { %1410 = vmatmul.msk.bf16.vlgmr.msrb.gmra.mxu2 %vm702_vm2, %v992_v8 }
 0x702   : > { %v990_v52 = vpop.f32.mrf.mxu1 }
 0x780   : > { %v1010_v53 = vpop.f32.mrf.mxu2 }
 0x781   : > { %v1014_v54 = vadd.f32 %v1010_v53, %v935_v41 }
 0x783   : > { %v1015_v55 = vadd.f32 %v1014_v54, %v1755_v3  ;;  %v1511_v54 = vld [vmem:[%s632_s1] ss:$0 sm:$0xff] }
 0x785   : > { %v1018_v56 = vsel %vm670_vm1, %v1015_v55, 0.0 }
 0x786   : > { %1019 = vadd.xlane.f32.xlu1 %v1018_v56  ;;  %v1512_v56 = vld [vmem:[%s635_s7] ss:$0 sm:$0xff] }
 0x788   : > { %v1012_v57 = vpop.f32.mrf.mxu2 }
 0x7f9   : > { %v1020_v1 = vpop.xlane.xlu1 %1019 }
 0x7fa   : > { %v1028_v2 = vmul.f32 %v1027_v0, %v1020_v1 }
 0x7fc   : > { %v1029_v3 = vsub.f32 %v1015_v55, %v1028_v2 }
 0x7fe   : > { %v1030_v4 = vmul.f32 %v1029_v3, %v1029_v3 }
 0x800   : > { %v1031_v5 = vsel %vm670_vm1, %v1030_v4, 0.0 }
 0x801   : > { %1032 = vadd.xlane.f32.xlu2 %v1031_v5 }
 0x874   : > { %v1033_v10 = vpop.xlane.xlu2 %1032 }
 0x875   : > { %v1034_v11 = vmul.f32 %v1033_v10, %v1027_v0 }
 0x877   : > { %v1035_v13 = vadd.f32 1e-05, %v1034_v11 }
 0x879   : > { %1531 = vrsqrt.f32 %v1035_v13  ;;  %vm1042_vm7 = vweird.f32 %v1035_v13 }
 0x87f   : > { %v1532_v14 = vpop.eup %1531 }
 0x880   : > { %v1037_v15 = vmul.f32 %v1532_v14, %v1035_v13  ;;  %vm1043_vm6 = vweird.f32 %v1532_v14 }
 0x881   : > { %vm1044_vm8 = vmor %vm1042_vm7, %vm1043_vm6 }
 0x882   : > { %v1038_v17 = vmul.f32 %v1532_v14, %v1037_v15 }
 0x884   : > { %v1039_v18 = vmul.f32 0.5, %v1038_v17 }
 0x886   : > { %v1040_v19 = vsub.f32 1.5, %v1039_v18 }
 0x888   : > { %v1041_v20 = vmul.f32 %v1532_v14, %v1040_v19 }
 0x88a   : > { %v1045_v22 = vsel %vm1044_vm8, %v1532_v14, %v1041_v20 }
 0x88b   : > { %v1046_v24 = vmul.f32 %v1045_v22, %v1029_v3 }
 0x88d   : > { %v1050_v25 = vmul.f32 %v1507_v21, %v1046_v24 }
 0x88f   : > { %v1054_v26 = vadd.f32 %v1508_v23, %v1050_v25 }
 0x891   : > { %v1055_v27 = vpack.c.bf16 %v1054_v26, %v1054_v26 }
 0x893   : > { %1419 = vmatmul.msk.bf16.vlgmr.msrb.gmra.mxu3 %vm670_vm1, %v1055_v27 }
 0x916   : > { %v1088_v31 = vpop.f32.mrf.mxu3 }
 0x917   : > { %v1089_v32 = vadd.f32 %v1509_v30, %v1088_v31 }
 0x919   : > { %v1092_v33 = vmax.f32 %v1089_v32, 0.0 }
 0x91b   : > { %v1093_v34 = vpack.c.bf16 %v1092_v33, %v1092_v33 }
 0x91d   : > { %1436 = vmatmul.msk.bf16.vlgmr.msrb.gmra.mxu0 %vm1130_vm9, %v1093_v34 }
 0x91e   : > { %v1090_v35 = vpop.f32.mrf.mxu3 }
 0x99a   : > { %v1143_v37 = vpop.f32.mrf.mxu0 }
 0x99b   : > { %v1144_v38 = vadd.f32 %v1510_v36, %v1143_v37 }
 0x99d   : > { %v1147_v39 = vadd.f32 %v1144_v38, %v1054_v26 }
 0x99f   : > { %v1150_v16 = vsel %vm670_vm1, %v1147_v39, 0.0 }
 0x9a0   : > { %1151 = vadd.xlane.f32.xlu1 %v1150_v16 }
 0x9a2   : > { %v1145_v40 = vpop.f32.mrf.mxu0 }
 0xa13   : > { %v1152_v41 = vpop.xlane.xlu1 %1151 }
 0xa14   : > { %v1153_v42 = vmul.f32 %v1152_v41, %v1027_v0 }
 0xa16   : > { %v1154_v43 = vsub.f32 %v1147_v39, %v1153_v42 }
 0xa18   : > { %v1155_v44 = vmul.f32 %v1154_v43, %v1154_v43 }
 0xa1a   : > { %v1156_v45 = vsel %vm670_vm1, %v1155_v44, 0.0 }
 0xa1b   : > { %1157 = vadd.xlane.f32.xlu0 %v1156_v45 }
 0xa8e   : > { %v1158_v46 = vpop.xlane.xlu0 %1157 }
 0xa8f   : > { %v1159_v47 = vmul.f32 %v1158_v46, %v1027_v0 }
 0xa91   : > { %v1160_v48 = vadd.f32 1e-05, %v1159_v47 }
 0xa93   : > { %1533 = vrsqrt.f32 %v1160_v48  ;;  %vm1167_vm11 = vweird.f32 %v1160_v48 }
 0xa99   : > { %v1534_v49 = vpop.eup %1533 }
 0xa9a   : > { %v1162_v50 = vmul.f32 %v1534_v49, %v1160_v48  ;;  %vm1168_vm10 = vweird.f32 %v1534_v49 }
 0xa9b   : > { %vm1169_vm12 = vmor %vm1167_vm11, %vm1168_vm10 }
 0xa9c   : > { %v1163_v51 = vmul.f32 %v1534_v49, %v1162_v50 }
 0xa9e   : > { %v1164_v8 = vmul.f32 0.5, %v1163_v51 }
 0xaa0   : > { %v1165_v52 = vsub.f32 1.5, %v1164_v8 }
 0xaa2   : > { %v1166_v53 = vmul.f32 %v1534_v49, %v1165_v52 }
 0xaa4   : > { %v1170_v55 = vsel %vm1169_vm12, %v1534_v49, %v1166_v53 }
 0xaa5   : > { %v1171_v57 = vmul.f32 %v1170_v55, %v1154_v43 }
 0xaa7   : > { %v1175_v58 = vmul.f32 %v1511_v54, %v1171_v57  ;;  %1184 = sbr.rel (%p1437_p8) target bundleno = 2740 (0xab4), region = 80 }
 0xaa9   : > { %v1179_v59 = vadd.f32 %v1512_v56, %v1175_v58 }
 0xaab   : > { %1180 = vst.msk [vmem:[#allocation2] sm:$0xff] %vm670_vm1, %v1179_v59 }
 0xab2   : > { %v1185_v60 = vld [vmem:[#allocation2] sm:$0xff] }
 0xab3   : > { %1186 = vst.msk [vmem:[%s1752_s8] sm:$0xff] %vm670_vm1, %v1185_v60 }
 0xab4 PF: > { %s1930_s1 = sld [smem:[#allocation6_spill]] }
 0xab5   : > { %s1931_s25 = sld [smem:[#allocation4_spill]] }
 0xab6   : > { %s1932_s26 = sld [smem:[#allocation5_spill]] }
 0xab7   : > { %s1933_s27 = sld [smem:[#allocation7_spill]] }
 0xab8   : > { %s1934_s28 = sld [smem:[#allocation8_spill]] }
 0xaba   : > { %s23_s29 = sadd.s32 1, %s1930_s1  }
 0xabb   : > { %p20_p9 = scmp.ge.s32.totalorder %s23_s29, 6  }
 0xabd   :  { %22 = sbr.rel (!%p20_p9) target bundleno = 9 (0x9), region = 149 }

</bundles_post_ra>
